<compile_context>
chip_gen: v6e
topology: v6e:2x2x1
jax: 0.10.0
libtpu: 0.0.40
codegen_flags: <defaults>
</compile_context>

<pallas_src>
import jax
import jax.numpy as jnp
from jax.experimental import pallas as pl
from jax.experimental.pallas import tpu as pltpu


# ----------------------------- Pallas kernel ------------------------------- #

def make_pinn_kernel(n_sub, sub, act_dtype):
    """Kernel closure over the sub-block split and the activation dtype."""

    def kernel(x_ref,
               w1_ref, b1_ref, w2_ref, b2_ref, w3_ref, b3_ref, w4_ref, b4_ref,
               wh_ref, bh_ref, comb_ref,
               o_ref):
        mdt = w1_ref.dtype                       # matmul dtype (bf16 or f32)

        def layer(w_ref, b_ref, h):
            # MXU: (128, K) @ (K, sub), f32 accumulation; bias + tanh in act_dtype.
            z = jnp.dot(w_ref[...], h, preferred_element_type=jnp.float32)
            z = z.astype(act_dtype) + b_ref[...]
            return jnp.tanh(z).astype(mdt)

        # Independent column sub-blocks, processed layer-by-layer so the EUP
        # tanh of one sub-block overlaps the MXU matmuls of the next.
        hs = [x_ref[:, pl.ds(j * sub, sub)] for j in range(n_sub)]
        for w_ref, b_ref in ((w1_ref, b1_ref), (w2_ref, b2_ref),
                             (w3_ref, b3_ref), (w4_ref, b4_ref)):
            hs = [layer(w_ref, b_ref, h) for h in hs]

        # Heads: row 0 = Cu, row 1 = Ni.  Epilogue stays f32 (only 2 rows).
        for j, h in enumerate(hs):
            z = jnp.dot(wh_ref[...], h,
                        preferred_element_type=jnp.float32) + bh_ref[...]
            # scale * sigmoid(0.5 z) * C  ==  comb * 0.5 * (1 + tanh(0.25 z))
            sig = 0.5 * (1.0 + jnp.tanh(0.25 * z))
            o_ref[:, pl.ds(j * sub, sub)] = (comb_ref[...] * sig).astype(o_ref.dtype)

    return kernel


def pinn_forward_pallas(inputs_t, params, *,
                        tile_n=2048, n_sub=2,
                        matmul_dtype=jnp.bfloat16, act_dtype=jnp.bfloat16,
                        min_grid_steps=1, feature_major_output=False):
    """inputs_t: (8, N) f32, feature-major (padded 5->8 features).

    Returns (N, 2) f32 == torch.cat([cu, ni], dim=1); or (2, N) if
    feature_major_output=True (avoids an extra HBM round-trip at large N).

    Precision presets:
      v6e/v7x fast path : matmul_dtype=bf16, act_dtype=bf16   (default)
      v5e path          : matmul_dtype=bf16, act_dtype=f32    (no bf16 EUP)
      exact check       : matmul_dtype=f32,  act_dtype=f32
    On v7x also pass min_grid_steps=4 so both TensorCores get >=2 pipelined steps.
    """
    F, N = inputs_t.shape
    assert F == 8, "input features must be padded to 8"
    assert tile_n % 128 == 0, "tile_n must be a multiple of 128"

    # Biggest lane-aligned tile that covers N / min_grid_steps (v5e/v6e:
    # min_grid_steps=1 -> one big tile; v7x: pass 4 for per-core pipelining).
    target = ((pl.cdiv(N, max(1, min_grid_steps)) + 127) // 128) * 128
    tile = max(128, min(tile_n, target))

    # Pick a sub-block count that keeps each sub-block a multiple of 128 lanes.
    sub_blocks = max(1, min(n_sub, tile // 128))
    while tile % (sub_blocks * 128) != 0:
        sub_blocks -= 1
    sub = tile // sub_blocks

    n_pad = pl.cdiv(N, tile) * tile

    (w1, b1, w2, b2, w3, b3, w4, b4, wh, bh, comb) = params
    mdt, adt = matmul_dtype, act_dtype

    x_op = inputs_t.astype(mdt)                       # pre-cast: halves input DMA
    if n_pad != N:
        x_op = jnp.pad(x_op, ((0, 0), (0, n_pad - N)))

    operands = (x_op,
                w1.astype(mdt), b1.astype(adt),
                w2.astype(mdt), b2.astype(adt),
                w3.astype(mdt), b3.astype(adt),
                w4.astype(mdt), b4.astype(adt),
                wh.astype(mdt), bh.astype(jnp.float32), comb.astype(jnp.float32))

    def const_spec(a):                                # resident weights
        return pl.BlockSpec(a.shape, lambda i: (0, 0))

    in_specs = [pl.BlockSpec((8, tile), lambda i: (0, i))]   # batch-tiled input
    in_specs += [const_spec(a) for a in operands[1:]]

    out_t = pl.pallas_call(
        make_pinn_kernel(sub_blocks, sub, adt),
        out_shape=jax.ShapeDtypeStruct((2, n_pad), jnp.float32),
        grid=(n_pad // tile,),
        in_specs=in_specs,
        out_specs=pl.BlockSpec((2, tile), lambda i: (0, i)),
        compiler_params=pltpu.CompilerParams(
            dimension_semantics=("parallel",)),
    )(*operands)

    if feature_major_output:
        return out_t[:, :N]                           # (2, N), no transpose
    return out_t[:, :N].T                             # (N, 2), matches PyTorch


# --------------------------- Parameter handling ----------------------------- #

def init_params(key, C_Cu, C_Ni):
    """Deterministic synthetic weights matching DualScaledPINN's shapes.

    Stored transposed (out_features, in_features) for the feature-major kernel;
    W1 is zero-padded 5 -> 8 input features."""
    ks = jax.random.split(key, 12)

    def lin_t(kw, kb, fan_in, fan_out):
        bound = 1.0 / jnp.sqrt(jnp.float32(fan_in))
        w = jax.random.uniform(kw, (fan_out, fan_in), jnp.float32, -bound, bound)
        b = jax.random.uniform(kb, (fan_out, 1), jnp.float32, -bound, bound)
        return w, b

    w1, b1 = lin_t(ks[0], ks[1], 5, 128)
    w1 = jnp.pad(w1, ((0, 0), (0, 3)))                    # (128, 8), padded cols = 0
    w2, b2 = lin_t(ks[2], ks[3], 128, 128)
    w3, b3 = lin_t(ks[4], ks[5], 128, 128)
    w4, b4 = lin_t(ks[6], ks[7], 128, 128)

    cu_w, cu_b = lin_t(ks[8], ks[9], 128, 1)               # cu_head[0]
    ni_w, ni_b = lin_t(ks[10], ks[11], 128, 1)             # ni_head[0]

    wh = jnp.concatenate([cu_w, ni_w], axis=0)             # (2, 128)
    bh = jnp.concatenate([cu_b, ni_b], axis=0)             # (2, 1)
    scale = jnp.ones((2, 1), jnp.float32)                  # SmoothSigmoid.scale = 1.0
    outw = jnp.array([[C_Cu], [C_Ni]], jnp.float32)        # Linear(1,1,bias=False)
    comb = scale * outw                                    # folded epilogue constant

    return (w1, b1, w2, b2, w3, b3, w4, b4, wh, bh, comb)


def build_inputs(x, y, t, Lx, Ly, T_max, C_Cu_norm, C_Ni_norm):
    """Normalization + concat (forward preamble), feature-major, padded to 8 rows."""
    n = x.shape[0]
    rows = [
        (x / Lx).reshape(1, n),
        (y / Ly).reshape(1, n),
        (t / T_max).reshape(1, n),
        jnp.full((1, n), C_Cu_norm, jnp.float32),
        jnp.full((1, n), C_Ni_norm, jnp.float32),
        jnp.zeros((3, n), jnp.float32),                    # pad features 5 -> 8
    ]
    return jnp.concatenate(rows, axis=0)                   # (8, N)


def reference_forward(inputs_t, params):
    (w1, b1, w2, b2, w3, b3, w4, b4, wh, bh, comb) = params
    h = jnp.tanh(w1 @ inputs_t + b1)
    h = jnp.tanh(w2 @ h + b2)
    h = jnp.tanh(w3 @ h + b3)
    h = jnp.tanh(w4 @ h + b4)
    z = wh @ h + bh
    sig = 1.0 / (1.0 + jnp.exp(-0.5 * z))
    return (comb * sig).T                                  # (N, 2)


# --------------------------------- Main ------------------------------------- #

if __name__ == "__main__":
    # Physical / normalization constants (same role as module __init__ args).
    Lx, Ly, T_max = 1e-4, 1e-4, 3600.0
    C_Cu, C_Ni = 0.0022, 0.0010
    C_Cu_norm = (C_Cu - 0.0015) / (0.0029 - 0.0015)
    C_Ni_norm = (C_Ni - 0.0) / (0.0018 - 0.0004)

    key = jax.random.PRNGKey(0)
    k_x, k_y, k_t, k_p = jax.random.split(key, 4)

    N = 256  # batch of collocation points; (N, 1) columns like the PyTorch module
    x = jax.random.uniform(k_x, (N, 1), jnp.float32, 0.0, Lx)
    y = jax.random.uniform(k_y, (N, 1), jnp.float32, 0.0, Ly)
    t = jax.random.uniform(k_t, (N, 1), jnp.float32, 0.0, T_max)

    params = init_params(k_p, C_Cu, C_Ni)
    inputs_t = build_inputs(x, y, t, Lx, Ly, T_max, C_Cu_norm, C_Ni_norm)
    ref = reference_forward(inputs_t, params)

    # Full-f32 path: tight correctness check.
    out_f32 = jax.block_until_ready(
        pinn_forward_pallas(inputs_t, params,
                            matmul_dtype=jnp.float32, act_dtype=jnp.float32))
    assert out_f32.shape == (N, 2) and out_f32.dtype == jnp.float32
    assert jnp.allclose(out_f32, ref, atol=2e-5, rtol=1e-3), "f32 mismatch vs reference"

    # v5e-style mixed path: bf16 MXU matmuls, f32 bias + tanh.
    out_mixed = jax.block_until_ready(
        pinn_forward_pallas(inputs_t, params,
                            matmul_dtype=jnp.bfloat16, act_dtype=jnp.float32))
    assert out_mixed.shape == (N, 2)
    assert jnp.allclose(out_mixed, ref, atol=5e-4, rtol=5e-2), "mixed mismatch vs reference"

    # Default v6e/v7x fast path: bf16 MXU + bf16 tanh (relaxed tolerance).
    out_bf16 = jax.block_until_ready(pinn_forward_pallas(inputs_t, params))
    assert out_bf16.shape == (N, 2) and out_bf16.dtype == jnp.float32
    assert jnp.allclose(out_bf16, ref, atol=5e-4, rtol=5e-2), "bf16 mismatch vs reference"

    print("KERNEL_OK")
</pallas_src>

<mosaic_0001>
module attributes {stable_mosaic.version = 11 : i64} {
  func.func @kernel(%arg0: i32, %arg1: memref<8x256xf32, #tpu.memory_space<vmem>>, %arg2: memref<128x8xf32, #tpu.memory_space<vmem>>, %arg3: memref<128x1xf32, #tpu.memory_space<vmem>>, %arg4: memref<128x128xf32, #tpu.memory_space<vmem>>, %arg5: memref<128x1xf32, #tpu.memory_space<vmem>>, %arg6: memref<128x128xf32, #tpu.memory_space<vmem>>, %arg7: memref<128x1xf32, #tpu.memory_space<vmem>>, %arg8: memref<128x128xf32, #tpu.memory_space<vmem>>, %arg9: memref<128x1xf32, #tpu.memory_space<vmem>>, %arg10: memref<2x128xf32, #tpu.memory_space<vmem>>, %arg11: memref<2x1xf32, #tpu.memory_space<vmem>>, %arg12: memref<2x1xf32, #tpu.memory_space<vmem>>, %arg13: memref<2x256xf32, #tpu.memory_space<vmem>>) attributes {dimension_semantics = [#tpu.dimension_semantics<parallel>], iteration_bounds = array<i64: 1>, scalar_prefetch = 0 : i64, scratch_operands = 0 : i64, tpu.core_type = #tpu.core_type<tc>, window_params = [{transform_indices = @transform_0, window_bounds = array<i64: 8, 256>}, {pipeline_mode = #tpu.pipeline_mode<synchronous>, transform_indices = @transform_1, window_bounds = array<i64: 128, 8>}, {pipeline_mode = #tpu.pipeline_mode<synchronous>, transform_indices = @transform_2, window_bounds = array<i64: 128, 1>}, {pipeline_mode = #tpu.pipeline_mode<synchronous>, transform_indices = @transform_3, window_bounds = array<i64: 128, 128>}, {pipeline_mode = #tpu.pipeline_mode<synchronous>, transform_indices = @transform_4, window_bounds = array<i64: 128, 1>}, {pipeline_mode = #tpu.pipeline_mode<synchronous>, transform_indices = @transform_5, window_bounds = array<i64: 128, 128>}, {pipeline_mode = #tpu.pipeline_mode<synchronous>, transform_indices = @transform_6, window_bounds = array<i64: 128, 1>}, {pipeline_mode = #tpu.pipeline_mode<synchronous>, transform_indices = @transform_7, window_bounds = array<i64: 128, 128>}, {pipeline_mode = #tpu.pipeline_mode<synchronous>, transform_indices = @transform_8, window_bounds = array<i64: 128, 1>}, {pipeline_mode = #tpu.pipeline_mode<synchronous>, transform_indices = @transform_9, window_bounds = array<i64: 2, 128>}, {pipeline_mode = #tpu.pipeline_mode<synchronous>, transform_indices = @transform_10, window_bounds = array<i64: 2, 1>}, {pipeline_mode = #tpu.pipeline_mode<synchronous>, transform_indices = @transform_11, window_bounds = array<i64: 2, 1>}, {transform_indices = @transform_12, window_bounds = array<i64: 2, 256>}]} {
    %c0 = arith.constant 0 : index
    %c0_0 = arith.constant 0 : index
    %0 = vector.load %arg1[%c0, %c0_0] : memref<8x256xf32, #tpu.memory_space<vmem>>, vector<8x128xf32>
    %c0_1 = arith.constant 0 : index
    %c128 = arith.constant 128 : index
    %1 = vector.load %arg1[%c0_1, %c128] : memref<8x256xf32, #tpu.memory_space<vmem>>, vector<8x128xf32>
    %c0_2 = arith.constant 0 : index
    %c0_3 = arith.constant 0 : index
    %2 = vector.load %arg2[%c0_2, %c0_3] : memref<128x8xf32, #tpu.memory_space<vmem>>, vector<128x8xf32>
    %cst = arith.constant dense<0.000000e+00> : vector<128x128xf32>
    %3 = tpu.matmul %2, %0, %cst {dimension_numbers = #tpu.dot_dimension_numbers<[1], [0], [0], [1], [0, 0, 1, 1], [], []>} : vector<128x8xf32>, vector<8x128xf32>, vector<128x128xf32> -> vector<128x128xf32>
    %c0_4 = arith.constant 0 : index
    %c0_5 = arith.constant 0 : index
    %4 = vector.load %arg3[%c0_4, %c0_5] : memref<128x1xf32, #tpu.memory_space<vmem>>, vector<128x1xf32>
    %5 = vector.broadcast %4 : vector<128x1xf32> to vector<128x128xf32>
    %6 = arith.addf %3, %5 : vector<128x128xf32>
    %7 = math.tanh %6 : vector<128x128xf32>
    %c0_6 = arith.constant 0 : index
    %c0_7 = arith.constant 0 : index
    %8 = vector.load %arg2[%c0_6, %c0_7] : memref<128x8xf32, #tpu.memory_space<vmem>>, vector<128x8xf32>
    %cst_8 = arith.constant dense<0.000000e+00> : vector<128x128xf32>
    %9 = tpu.matmul %8, %1, %cst_8 {dimension_numbers = #tpu.dot_dimension_numbers<[1], [0], [0], [1], [0, 0, 1, 1], [], []>} : vector<128x8xf32>, vector<8x128xf32>, vector<128x128xf32> -> vector<128x128xf32>
    %c0_9 = arith.constant 0 : index
    %c0_10 = arith.constant 0 : index
    %10 = vector.load %arg3[%c0_9, %c0_10] : memref<128x1xf32, #tpu.memory_space<vmem>>, vector<128x1xf32>
    %11 = vector.broadcast %10 : vector<128x1xf32> to vector<128x128xf32>
    %12 = arith.addf %9, %11 : vector<128x128xf32>
    %13 = math.tanh %12 : vector<128x128xf32>
    %c0_11 = arith.constant 0 : index
    %c0_12 = arith.constant 0 : index
    %14 = vector.load %arg4[%c0_11, %c0_12] : memref<128x128xf32, #tpu.memory_space<vmem>>, vector<128x128xf32>
    %cst_13 = arith.constant dense<0.000000e+00> : vector<128x128xf32>
    %15 = tpu.matmul %14, %7, %cst_13 {dimension_numbers = #tpu.dot_dimension_numbers<[1], [0], [0], [1], [0, 0, 1, 1], [], []>} : vector<128x128xf32>, vector<128x128xf32>, vector<128x128xf32> -> vector<128x128xf32>
    %c0_14 = arith.constant 0 : index
    %c0_15 = arith.constant 0 : index
    %16 = vector.load %arg5[%c0_14, %c0_15] : memref<128x1xf32, #tpu.memory_space<vmem>>, vector<128x1xf32>
    %17 = vector.broadcast %16 : vector<128x1xf32> to vector<128x128xf32>
    %18 = arith.addf %15, %17 : vector<128x128xf32>
    %19 = math.tanh %18 : vector<128x128xf32>
    %c0_16 = arith.constant 0 : index
    %c0_17 = arith.constant 0 : index
    %20 = vector.load %arg4[%c0_16, %c0_17] : memref<128x128xf32, #tpu.memory_space<vmem>>, vector<128x128xf32>
    %cst_18 = arith.constant dense<0.000000e+00> : vector<128x128xf32>
    %21 = tpu.matmul %20, %13, %cst_18 {dimension_numbers = #tpu.dot_dimension_numbers<[1], [0], [0], [1], [0, 0, 1, 1], [], []>} : vector<128x128xf32>, vector<128x128xf32>, vector<128x128xf32> -> vector<128x128xf32>
    %c0_19 = arith.constant 0 : index
    %c0_20 = arith.constant 0 : index
    %22 = vector.load %arg5[%c0_19, %c0_20] : memref<128x1xf32, #tpu.memory_space<vmem>>, vector<128x1xf32>
    %23 = vector.broadcast %22 : vector<128x1xf32> to vector<128x128xf32>
    %24 = arith.addf %21, %23 : vector<128x128xf32>
    %25 = math.tanh %24 : vector<128x128xf32>
    %c0_21 = arith.constant 0 : index
    %c0_22 = arith.constant 0 : index
    %26 = vector.load %arg6[%c0_21, %c0_22] : memref<128x128xf32, #tpu.memory_space<vmem>>, vector<128x128xf32>
    %cst_23 = arith.constant dense<0.000000e+00> : vector<128x128xf32>
    %27 = tpu.matmul %26, %19, %cst_23 {dimension_numbers = #tpu.dot_dimension_numbers<[1], [0], [0], [1], [0, 0, 1, 1], [], []>} : vector<128x128xf32>, vector<128x128xf32>, vector<128x128xf32> -> vector<128x128xf32>
    %c0_24 = arith.constant 0 : index
    %c0_25 = arith.constant 0 : index
    %28 = vector.load %arg7[%c0_24, %c0_25] : memref<128x1xf32, #tpu.memory_space<vmem>>, vector<128x1xf32>
    %29 = vector.broadcast %28 : vector<128x1xf32> to vector<128x128xf32>
    %30 = arith.addf %27, %29 : vector<128x128xf32>
    %31 = math.tanh %30 : vector<128x128xf32>
    %c0_26 = arith.constant 0 : index
    %c0_27 = arith.constant 0 : index
    %32 = vector.load %arg6[%c0_26, %c0_27] : memref<128x128xf32, #tpu.memory_space<vmem>>, vector<128x128xf32>
    %cst_28 = arith.constant dense<0.000000e+00> : vector<128x128xf32>
    %33 = tpu.matmul %32, %25, %cst_28 {dimension_numbers = #tpu.dot_dimension_numbers<[1], [0], [0], [1], [0, 0, 1, 1], [], []>} : vector<128x128xf32>, vector<128x128xf32>, vector<128x128xf32> -> vector<128x128xf32>
    %c0_29 = arith.constant 0 : index
    %c0_30 = arith.constant 0 : index
    %34 = vector.load %arg7[%c0_29, %c0_30] : memref<128x1xf32, #tpu.memory_space<vmem>>, vector<128x1xf32>
    %35 = vector.broadcast %34 : vector<128x1xf32> to vector<128x128xf32>
    %36 = arith.addf %33, %35 : vector<128x128xf32>
    %37 = math.tanh %36 : vector<128x128xf32>
    %c0_31 = arith.constant 0 : index
    %c0_32 = arith.constant 0 : index
    %38 = vector.load %arg8[%c0_31, %c0_32] : memref<128x128xf32, #tpu.memory_space<vmem>>, vector<128x128xf32>
    %cst_33 = arith.constant dense<0.000000e+00> : vector<128x128xf32>
    %39 = tpu.matmul %38, %31, %cst_33 {dimension_numbers = #tpu.dot_dimension_numbers<[1], [0], [0], [1], [0, 0, 1, 1], [], []>} : vector<128x128xf32>, vector<128x128xf32>, vector<128x128xf32> -> vector<128x128xf32>
    %c0_34 = arith.constant 0 : index
    %c0_35 = arith.constant 0 : index
    %40 = vector.load %arg9[%c0_34, %c0_35] : memref<128x1xf32, #tpu.memory_space<vmem>>, vector<128x1xf32>
    %41 = vector.broadcast %40 : vector<128x1xf32> to vector<128x128xf32>
    %42 = arith.addf %39, %41 : vector<128x128xf32>
    %43 = math.tanh %42 : vector<128x128xf32>
    %c0_36 = arith.constant 0 : index
    %c0_37 = arith.constant 0 : index
    %44 = vector.load %arg8[%c0_36, %c0_37] : memref<128x128xf32, #tpu.memory_space<vmem>>, vector<128x128xf32>
    %cst_38 = arith.constant dense<0.000000e+00> : vector<128x128xf32>
    %45 = tpu.matmul %44, %37, %cst_38 {dimension_numbers = #tpu.dot_dimension_numbers<[1], [0], [0], [1], [0, 0, 1, 1], [], []>} : vector<128x128xf32>, vector<128x128xf32>, vector<128x128xf32> -> vector<128x128xf32>
    %c0_39 = arith.constant 0 : index
    %c0_40 = arith.constant 0 : index
    %46 = vector.load %arg9[%c0_39, %c0_40] : memref<128x1xf32, #tpu.memory_space<vmem>>, vector<128x1xf32>
    %47 = vector.broadcast %46 : vector<128x1xf32> to vector<128x128xf32>
    %48 = arith.addf %45, %47 : vector<128x128xf32>
    %49 = math.tanh %48 : vector<128x128xf32>
    %c0_41 = arith.constant 0 : index
    %c0_42 = arith.constant 0 : index
    %50 = vector.load %arg10[%c0_41, %c0_42] : memref<2x128xf32, #tpu.memory_space<vmem>>, vector<2x128xf32>
    %cst_43 = arith.constant dense<0.000000e+00> : vector<2x128xf32>
    %51 = tpu.matmul %50, %43, %cst_43 {dimension_numbers = #tpu.dot_dimension_numbers<[1], [0], [0], [1], [0, 0, 1, 1], [], []>} : vector<2x128xf32>, vector<128x128xf32>, vector<2x128xf32> -> vector<2x128xf32>
    %c0_44 = arith.constant 0 : index
    %c0_45 = arith.constant 0 : index
    %52 = vector.load %arg11[%c0_44, %c0_45] : memref<2x1xf32, #tpu.memory_space<vmem>>, vector<2x1xf32>
    %53 = vector.broadcast %52 : vector<2x1xf32> to vector<2x128xf32>
    %54 = arith.addf %51, %53 : vector<2x128xf32>
    %cst_46 = arith.constant 2.500000e-01 : f32
    %55 = vector.broadcast %cst_46 : f32 to vector<2x128xf32>
    %56 = arith.mulf %55, %54 : vector<2x128xf32>
    %57 = math.tanh %56 : vector<2x128xf32>
    %cst_47 = arith.constant 1.000000e+00 : f32
    %58 = vector.broadcast %cst_47 : f32 to vector<2x128xf32>
    %59 = arith.addf %58, %57 : vector<2x128xf32>
    %cst_48 = arith.constant 5.000000e-01 : f32
    %60 = vector.broadcast %cst_48 : f32 to vector<2x128xf32>
    %61 = arith.mulf %60, %59 : vector<2x128xf32>
    %c0_49 = arith.constant 0 : index
    %c0_50 = arith.constant 0 : index
    %62 = vector.load %arg12[%c0_49, %c0_50] : memref<2x1xf32, #tpu.memory_space<vmem>>, vector<2x1xf32>
    %63 = vector.broadcast %62 : vector<2x1xf32> to vector<2x128xf32>
    %64 = arith.mulf %63, %61 : vector<2x128xf32>
    %c0_51 = arith.constant 0 : index
    %c0_52 = arith.constant 0 : index
    %65 = vector.load %arg13[%c0_51, %c0_52] : memref<2x256xf32, #tpu.memory_space<vmem>>, vector<2x128xf32>
    tpu.vector_store %arg13[%c0_51, %c0_52], %64 {strides = array<i32>} : memref<2x256xf32, #tpu.memory_space<vmem>>, vector<2x128xf32>,
    %c0_53 = arith.constant 0 : index
    %c0_54 = arith.constant 0 : index
    %66 = vector.load %arg10[%c0_53, %c0_54] : memref<2x128xf32, #tpu.memory_space<vmem>>, vector<2x128xf32>
    %cst_55 = arith.constant dense<0.000000e+00> : vector<2x128xf32>
    %67 = tpu.matmul %66, %49, %cst_55 {dimension_numbers = #tpu.dot_dimension_numbers<[1], [0], [0], [1], [0, 0, 1, 1], [], []>} : vector<2x128xf32>, vector<128x128xf32>, vector<2x128xf32> -> vector<2x128xf32>
    %c0_56 = arith.constant 0 : index
    %c0_57 = arith.constant 0 : index
    %68 = vector.load %arg11[%c0_56, %c0_57] : memref<2x1xf32, #tpu.memory_space<vmem>>, vector<2x1xf32>
    %69 = vector.broadcast %68 : vector<2x1xf32> to vector<2x128xf32>
    %70 = arith.addf %67, %69 : vector<2x128xf32>
    %cst_58 = arith.constant 2.500000e-01 : f32
    %71 = vector.broadcast %cst_58 : f32 to vector<2x128xf32>
    %72 = arith.mulf %71, %70 : vector<2x128xf32>
    %73 = math.tanh %72 : vector<2x128xf32>
    %cst_59 = arith.constant 1.000000e+00 : f32
    %74 = vector.broadcast %cst_59 : f32 to vector<2x128xf32>
    %75 = arith.addf %74, %73 : vector<2x128xf32>
    %cst_60 = arith.constant 5.000000e-01 : f32
    %76 = vector.broadcast %cst_60 : f32 to vector<2x128xf32>
    %77 = arith.mulf %76, %75 : vector<2x128xf32>
    %c0_61 = arith.constant 0 : index
    %c0_62 = arith.constant 0 : index
    %78 = vector.load %arg12[%c0_61, %c0_62] : memref<2x1xf32, #tpu.memory_space<vmem>>, vector<2x1xf32>
    %79 = vector.broadcast %78 : vector<2x1xf32> to vector<2x128xf32>
    %80 = arith.mulf %79, %77 : vector<2x128xf32>
    %c0_63 = arith.constant 0 : index
    %c128_64 = arith.constant 128 : index
    %81 = vector.load %arg13[%c0_63, %c128_64] : memref<2x256xf32, #tpu.memory_space<vmem>>, vector<2x128xf32>
    tpu.vector_store %arg13[%c0_63, %c128_64], %80 {strides = array<i32>} : memref<2x256xf32, #tpu.memory_space<vmem>>, vector<2x128xf32>,
    return
  }
  func.func @transform_0(%arg0: i32) -> (i32, i32) {
    %c0_i32 = arith.constant 0 : i32
    %c0_i32_0 = arith.constant 0 : i32
    return %c0_i32, %arg0 : i32, i32
  }
  func.func @transform_1(%arg0: i32) -> (i32, i32) {
    %c0_i32 = arith.constant 0 : i32
    %c0_i32_0 = arith.constant 0 : i32
    %c0_i32_1 = arith.constant 0 : i32
    return %c0_i32, %c0_i32_0 : i32, i32
  }
  func.func @transform_2(%arg0: i32) -> (i32, i32) {
    %c0_i32 = arith.constant 0 : i32
    %c0_i32_0 = arith.constant 0 : i32
    %c0_i32_1 = arith.constant 0 : i32
    return %c0_i32, %c0_i32_0 : i32, i32
  }
  func.func @transform_3(%arg0: i32) -> (i32, i32) {
    %c0_i32 = arith.constant 0 : i32
    %c0_i32_0 = arith.constant 0 : i32
    %c0_i32_1 = arith.constant 0 : i32
    return %c0_i32, %c0_i32_0 : i32, i32
  }
  func.func @transform_4(%arg0: i32) -> (i32, i32) {
    %c0_i32 = arith.constant 0 : i32
    %c0_i32_0 = arith.constant 0 : i32
    %c0_i32_1 = arith.constant 0 : i32
    return %c0_i32, %c0_i32_0 : i32, i32
  }
  func.func @transform_5(%arg0: i32) -> (i32, i32) {
    %c0_i32 = arith.constant 0 : i32
    %c0_i32_0 = arith.constant 0 : i32
    %c0_i32_1 = arith.constant 0 : i32
    return %c0_i32, %c0_i32_0 : i32, i32
  }
  func.func @transform_6(%arg0: i32) -> (i32, i32) {
    %c0_i32 = arith.constant 0 : i32
    %c0_i32_0 = arith.constant 0 : i32
    %c0_i32_1 = arith.constant 0 : i32
    return %c0_i32, %c0_i32_0 : i32, i32
  }
  func.func @transform_7(%arg0: i32) -> (i32, i32) {
    %c0_i32 = arith.constant 0 : i32
    %c0_i32_0 = arith.constant 0 : i32
    %c0_i32_1 = arith.constant 0 : i32
    return %c0_i32, %c0_i32_0 : i32, i32
  }
  func.func @transform_8(%arg0: i32) -> (i32, i32) {
    %c0_i32 = arith.constant 0 : i32
    %c0_i32_0 = arith.constant 0 : i32
    %c0_i32_1 = arith.constant 0 : i32
    return %c0_i32, %c0_i32_0 : i32, i32
  }
  func.func @transform_9(%arg0: i32) -> (i32, i32) {
    %c0_i32 = arith.constant 0 : i32
    %c0_i32_0 = arith.constant 0 : i32
    %c0_i32_1 = arith.constant 0 : i32
    return %c0_i32, %c0_i32_0 : i32, i32
  }
  func.func @transform_10(%arg0: i32) -> (i32, i32) {
    %c0_i32 = arith.constant 0 : i32
    %c0_i32_0 = arith.constant 0 : i32
    %c0_i32_1 = arith.constant 0 : i32
    return %c0_i32, %c0_i32_0 : i32, i32
  }
  func.func @transform_11(%arg0: i32) -> (i32, i32) {
    %c0_i32 = arith.constant 0 : i32
    %c0_i32_0 = arith.constant 0 : i32
    %c0_i32_1 = arith.constant 0 : i32
    return %c0_i32, %c0_i32_0 : i32, i32
  }
  func.func @transform_12(%arg0: i32) -> (i32, i32) {
    %c0_i32 = arith.constant 0 : i32
    %c0_i32_0 = arith.constant 0 : i32
    return %c0_i32, %arg0 : i32, i32
  }
}

</mosaic_0001>

<bundles_post_ra>
// kernel: tpu_custom_call.1
= control target key start
LH: loop header
LB: loop body
LE: loop exit
PB: predicated region body
PF: predicated region fallthrough
CT: control target
= control target key end

     0   :  { %v3059_v3 = vmov 0   ;;  %vm156_vm0 = vcmask 64512   ;;  %s3761_s0 = inlined_call_operand.vmem [shape: f32[8,256], index: 0, kind: input, shape index: {}]   ;;  %s3762_s1 = inlined_call_operand.vmem [shape: f32[128,8], index: 1, kind: input, shape index: {}]   ;;  %s3763_s2 = inlined_call_operand.vmem [shape: f32[128,1], index: 2, kind: input, shape index: {}]   ;;  %s3764_s3 = inlined_call_operand.vmem [shape: f32[128,128], index: 3, kind: input, shape index: {}]   ;;  %s3765_s4 = inlined_call_operand.vmem [shape: f32[128,1], index: 4, kind: input, shape index: {}]   ;;  %s3766_s5 = inlined_call_operand.vmem [shape: f32[128,128], index: 5, kind: input, shape index: {}]   ;;  %s3767_s6 = inlined_call_operand.vmem [shape: f32[128,1], index: 6, kind: input, shape index: {}]   ;;  %s3768_s7 = inlined_call_operand.vmem [shape: f32[128,128], index: 7, kind: input, shape index: {}]   ;;  %s3769_s8 = inlined_call_operand.vmem [shape: f32[128,1], index: 8, kind: input, shape index: {}]   ;;  %s3770_s9 = inlined_call_operand.vmem [shape: f32[2,128], index: 9, kind: input, shape index: {}]   ;;  %s3771_s10 = inlined_call_operand.vmem [shape: f32[2,1], index: 10, kind: input, shape index: {}]   ;;  %s3772_s11 = inlined_call_operand.vmem [shape: f32[2,1], index: 11, kind: input, shape index: {}]   ;;  %s3773_s12 = inlined_call_operand.hbm [shape: f32[2,256], index: 12, kind: output, shape index: {}]  }
   0x1   :  { %v42_v0 = vld [vmem:[%s3761_s0] sm:$0xff]  ;;  %v43_v1 = vld [vmem:[%s3761_s0 + $0x8] sm:$0xff]  ;;  %v75_v2 = vld [vmem:[%s3763_s2 + $0x78] sm:$0xff]  ;;  %2776 = vset.pattern.permute.xlu1 %v3059_v3  ;;  %2775 = vset.pattern.permute.xlu0 %v3059_v3 }
   0x2   :  { %v73_v4 = vld [vmem:[%s3763_s2 + $0x68] sm:$0xff]  ;;  %v44_v5 = vld [vmem:[%s3762_s1] sm:$0xff]  ;;  %2313 = vmatprep.subr.mxu0 %v42_v0  ;;  %2339 = vmatprep.subr.mxu1 %v43_v1  ;;  %v74_v7 = vld [vmem:[%s3763_s2 + $0x70] sm:$0xff] }
   0x3   :  { %153 = vperm.xlu0 %2775, %v75_v2   ;;  %143 = vperm.xlu1 %2776, %v73_v4   ;;  %v45_v6 = vld [vmem:[%s3762_s1 + $0x8] sm:$0xff]  ;;  %v72_v8 = vld [vmem:[%s3763_s2 + $0x60] sm:$0xff]  ;;  %v46_v9 = vld [vmem:[%s3762_s1 + $0x10] sm:$0xff] }
   0x4   :  { %2314 = vmatpush3.msra.mxu0 %v42_v0  ;;  %2315 = vmatprep.mubr.msk.f32.mxu0 %vm156_vm0, %v44_v5  ;;  %v47_v10 = vld [vmem:[%s3762_s1 + $0x18] sm:$0xff]  ;;  %v70_v12 = vld [vmem:[%s3763_s2 + $0x50] sm:$0xff]  ;;  %v48_v13 = vld [vmem:[%s3762_s1 + $0x20] sm:$0xff] }
   0x5   :  { %2340 = vmatpush3.msra.mxu1 %v43_v1  ;;  %2341 = vmatprep.mubr.msk.f32.mxu1 %vm156_vm0, %v44_v5  ;;  %v71_v11 = vld [vmem:[%s3763_s2 + $0x58] sm:$0xff]  ;;  %v49_v14 = vld [vmem:[%s3762_s1 + $0x28] sm:$0xff]  ;;  %v68_v16 = vld [vmem:[%s3763_s2 + $0x40] sm:$0xff] }
   0x6   :  { %2316 = vmatmul.mubr.msk.f32.vlgmr.msra.gmra.mxu0 %vm156_vm0, %v45_v6  ;;  %2342 = vmatmul.mubr.msk.f32.vlgmr.msra.gmra.mxu1 %vm156_vm0, %v45_v6  ;;  %v69_v15 = vld [vmem:[%s3763_s2 + $0x48] sm:$0xff]  ;;  %v50_v17 = vld [vmem:[%s3762_s1 + $0x30] sm:$0xff]  ;;  %v51_v18 = vld [vmem:[%s3762_s1 + $0x38] sm:$0xff] }
   0x7   :  { %148 = vperm.xlu0 %2775, %v74_v7   ;;  %138 = vperm.xlu1 %2776, %v72_v8   ;;  %v67_v19 = vld [vmem:[%s3763_s2 + $0x38] sm:$0xff]  ;;  %v66_v20 = vld [vmem:[%s3763_s2 + $0x30] sm:$0xff]  ;;  %v52_v21 = vld [vmem:[%s3762_s1 + $0x40] sm:$0xff] }
   0x8   :  { %2318 = vmatprep.mubr.msk.f32.mxu0 %vm156_vm0, %v46_v9  ;;  %2344 = vmatprep.mubr.msk.f32.mxu1 %vm156_vm0, %v46_v9  ;;  %v53_v22 = vld [vmem:[%s3762_s1 + $0x48] sm:$0xff]  ;;  %v64_v24 = vld [vmem:[%s3763_s2 + $0x20] sm:$0xff]  ;;  %v54_v25 = vld [vmem:[%s3762_s1 + $0x50] sm:$0xff] }
   0x9   :  { %v65_v23 = vld [vmem:[%s3763_s2 + $0x28] sm:$0xff]  ;;  %v55_v26 = vld [vmem:[%s3762_s1 + $0x58] sm:$0xff]  ;;  %v62_v28 = vld [vmem:[%s3763_s2 + $0x10] sm:$0xff] }
   0xa   :  { %2319 = vmatmul.mubr.msk.f32.gmra.mxu0 %vm156_vm0, %v47_v10  ;;  %2345 = vmatmul.mubr.msk.f32.gmra.mxu1 %vm156_vm0, %v47_v10  ;;  %v63_v27 = vld [vmem:[%s3763_s2 + $0x18] sm:$0xff]  ;;  %v56_v29 = vld [vmem:[%s3762_s1 + $0x60] sm:$0xff]  ;;  %v57_v30 = vld [vmem:[%s3762_s1 + $0x68] sm:$0xff] }
   0xb   :  { %133 = vperm.xlu0 %2775, %v71_v11   ;;  %128 = vperm.xlu1 %2776, %v70_v12   ;;  %v61_v31 = vld [vmem:[%s3763_s2 + $0x8] sm:$0xff]  ;;  %v60_v32 = vld [vmem:[%s3763_s2] sm:$0xff] }
   0xc   :  { %2321 = vmatprep.mubr.msk.f32.mxu0 %vm156_vm0, %v48_v13  ;;  %2347 = vmatprep.mubr.msk.f32.mxu1 %vm156_vm0, %v48_v13 }
   0xe   :  { %2322 = vmatmul.mubr.msk.f32.gmra.mxu0 %vm156_vm0, %v49_v14  ;;  %2348 = vmatmul.mubr.msk.f32.gmra.mxu1 %vm156_vm0, %v49_v14 }
   0xf   :  { %123 = vperm.xlu0 %2775, %v69_v15   ;;  %118 = vperm.xlu1 %2776, %v68_v16  }
  0x10   :  { %2324 = vmatprep.mubr.msk.f32.mxu0 %vm156_vm0, %v50_v17  ;;  %2350 = vmatprep.mubr.msk.f32.mxu1 %vm156_vm0, %v50_v17 }
  0x12   :  { %2325 = vmatmul.mubr.msk.f32.gmra.mxu0 %vm156_vm0, %v51_v18  ;;  %2351 = vmatmul.mubr.msk.f32.gmra.mxu1 %vm156_vm0, %v51_v18 }
  0x13   :  { %113 = vperm.xlu0 %2775, %v67_v19   ;;  %108 = vperm.xlu1 %2776, %v66_v20  }
  0x14   :  { %2327 = vmatprep.mubr.msk.f32.mxu0 %vm156_vm0, %v52_v21  ;;  %2353 = vmatprep.mubr.msk.f32.mxu1 %vm156_vm0, %v52_v21 }
  0x16   :  { %2328 = vmatmul.mubr.msk.f32.gmra.mxu0 %vm156_vm0, %v53_v22  ;;  %2354 = vmatmul.mubr.msk.f32.gmra.mxu1 %vm156_vm0, %v53_v22 }
  0x17   :  { %103 = vperm.xlu0 %2775, %v65_v23   ;;  %98 = vperm.xlu1 %2776, %v64_v24  }
  0x18   :  { %2330 = vmatprep.mubr.msk.f32.mxu0 %vm156_vm0, %v54_v25  ;;  %2356 = vmatprep.mubr.msk.f32.mxu1 %vm156_vm0, %v54_v25 }
  0x1a   :  { %2331 = vmatmul.mubr.msk.f32.gmra.mxu0 %vm156_vm0, %v55_v26  ;;  %2357 = vmatmul.mubr.msk.f32.gmra.mxu1 %vm156_vm0, %v55_v26 }
  0x1b   :  { %93 = vperm.xlu0 %2775, %v63_v27   ;;  %88 = vperm.xlu1 %2776, %v62_v28  }
  0x1c   :  { %2333 = vmatprep.mubr.msk.f32.mxu0 %vm156_vm0, %v56_v29  ;;  %2359 = vmatprep.mubr.msk.f32.mxu1 %vm156_vm0, %v56_v29 }
  0x1d   :  { %17 = vsyncpa [#allocation3], 0  ;;  %v58_v33 = vld [vmem:[%s3762_s1 + $0x70] sm:$0xff]  ;;  %v59_v34 = vld [vmem:[%s3762_s1 + $0x78] sm:$0xff]  ;;  %vm3061_vm1 = vmmov 0  }
  0x1e   :  { %2334 = vmatmul.mubr.msk.f32.gmra.mxu0 %vm156_vm0, %v57_v30  ;;  %2360 = vmatmul.mubr.msk.f32.gmra.mxu1 %vm156_vm0, %v57_v30  ;;  %v558_v35 = vld [vmem:[%s3765_s4 + $0x78] sm:$0xff]  ;;  %v557_v36 = vld [vmem:[%s3765_s4 + $0x70] sm:$0xff]  ;;  %v556_v37 = vld [vmem:[%s3765_s4 + $0x68] sm:$0xff] }
  0x1f   :  { %83 = vperm.xlu0 %2775, %v61_v31   ;;  %78 = vperm.xlu1 %2776, %v60_v32   ;;  %v555_v38 = vld [vmem:[%s3765_s4 + $0x60] sm:$0xff]  ;;  %v554_v39 = vld [vmem:[%s3765_s4 + $0x58] sm:$0xff]  ;;  %v553_v40 = vld [vmem:[%s3765_s4 + $0x50] sm:$0xff] }
  0x20   :  { %2336 = vmatprep.mubr.msk.f32.mxu0 %vm156_vm0, %v58_v33  ;;  %2362 = vmatprep.mubr.msk.f32.mxu1 %vm156_vm0, %v58_v33  ;;  %v552_v41 = vld [vmem:[%s3765_s4 + $0x48] sm:$0xff]  ;;  %v551_v42 = vld [vmem:[%s3765_s4 + $0x40] sm:$0xff]  ;;  %v550_v43 = vld [vmem:[%s3765_s4 + $0x38] sm:$0xff] }
  0x21   :  { %v549_v44 = vld [vmem:[%s3765_s4 + $0x30] sm:$0xff]  ;;  %v548_v45 = vld [vmem:[%s3765_s4 + $0x28] sm:$0xff]  ;;  %v547_v46 = vld [vmem:[%s3765_s4 + $0x20] sm:$0xff] }
  0x22   :  { %2337 = vmatmul.mubr.msk.f32.gmra.mxu0 %vm156_vm0, %v59_v34  ;;  %2363 = vmatmul.mubr.msk.f32.gmra.mxu1 %vm156_vm0, %v59_v34  ;;  %v546_v47 = vld [vmem:[%s3765_s4 + $0x18] sm:$0xff]  ;;  %v545_v48 = vld [vmem:[%s3765_s4 + $0x10] sm:$0xff]  ;;  %v544_v49 = vld [vmem:[%s3765_s4 + $0x8] sm:$0xff] }
  0x23   :  { %636 = vperm.xlu0 %2775, %v558_v35   ;;  %631 = vperm.xlu1 %2776, %v557_v36   ;;  %v543_v50 = vld [vmem:[%s3765_s4] sm:$0xff]  ;;  %v992_v51 = vld [vmem:[%s3767_s6 + $0x78] sm:$0xff]  ;;  %v991_v52 = vld [vmem:[%s3767_s6 + $0x70] sm:$0xff] }
  0x24   :  { %v990_v53 = vld [vmem:[%s3767_s6 + $0x68] sm:$0xff]  ;;  %v989_v54 = vld [vmem:[%s3767_s6 + $0x60] sm:$0xff]  ;;  %v988_v55 = vld [vmem:[%s3767_s6 + $0x58] sm:$0xff] }
  0x25   :  { %v987_v56 = vld [vmem:[%s3767_s6 + $0x50] sm:$0xff]  ;;  %v986_v57 = vld [vmem:[%s3767_s6 + $0x48] sm:$0xff]  ;;  %v985_v58 = vld [vmem:[%s3767_s6 + $0x40] sm:$0xff] }
  0x26   :  { %v984_v59 = vld [vmem:[%s3767_s6 + $0x38] sm:$0xff]  ;;  %v983_v60 = vld [vmem:[%s3767_s6 + $0x30] sm:$0xff]  ;;  %v982_v61 = vld [vmem:[%s3767_s6 + $0x28] sm:$0xff] }
  0x27   :  { %626 = vperm.xlu0 %2775, %v556_v37   ;;  %621 = vperm.xlu1 %2776, %v555_v38   ;;  %v981_v62 = vld [vmem:[%s3767_s6 + $0x20] sm:$0xff]  ;;  %v980_v63 = vld [vmem:[%s3767_s6 + $0x18] sm:$0xff]  ;;  %v979_v0 = vld [vmem:[%s3767_s6 + $0x10] sm:$0xff] }
  0x28   :  { %v978_v1 = vld [vmem:[%s3767_s6 + $0x8] sm:$0xff]  ;;  %v977_v2 = vld [vmem:[%s3767_s6] sm:$0xff]  ;;  %v1426_v3 = vld [vmem:[%s3769_s8 + $0x78] sm:$0xff] }
  0x29   :  { %v1425_v4 = vld [vmem:[%s3769_s8 + $0x70] sm:$0xff]  ;;  %v1424_v5 = vld [vmem:[%s3769_s8 + $0x68] sm:$0xff]  ;;  %v1423_v6 = vld [vmem:[%s3769_s8 + $0x60] sm:$0xff] }
  0x2a   :  { %v1422_v7 = vld [vmem:[%s3769_s8 + $0x58] sm:$0xff]  ;;  %v1421_v8 = vld [vmem:[%s3769_s8 + $0x50] sm:$0xff]  ;;  %v1420_v9 = vld [vmem:[%s3769_s8 + $0x48] sm:$0xff] }
  0x2b   :  { %616 = vperm.xlu0 %2775, %v554_v39   ;;  %611 = vperm.xlu1 %2776, %v553_v40   ;;  %v1419_v10 = vld [vmem:[%s3769_s8 + $0x40] sm:$0xff]  ;;  %v1418_v11 = vld [vmem:[%s3769_s8 + $0x38] sm:$0xff]  ;;  %v1417_v12 = vld [vmem:[%s3769_s8 + $0x30] sm:$0xff] }
  0x2c   :  { %v1416_v13 = vld [vmem:[%s3769_s8 + $0x28] sm:$0xff]  ;;  %v1415_v14 = vld [vmem:[%s3769_s8 + $0x20] sm:$0xff]  ;;  %v1414_v15 = vld [vmem:[%s3769_s8 + $0x18] sm:$0xff] }
  0x2d   :  { %v1413_v16 = vld [vmem:[%s3769_s8 + $0x10] sm:$0xff]  ;;  %v1412_v17 = vld [vmem:[%s3769_s8 + $0x8] sm:$0xff]  ;;  %v1411_v18 = vld [vmem:[%s3769_s8] sm:$0xff] }
  0x2e   :  { %v1830_v19 = vld [vmem:[%s3771_s10] sm:$0x3] }
  0x2f   :  { %606 = vperm.xlu0 %2775, %v552_v41   ;;  %601 = vperm.xlu1 %2776, %v551_v42   ;;  %v1919_v20 = vld [vmem:[%s3771_s10] sm:$0x3] }
  0x30   :  { %v1910_v21 = vld [vmem:[%s3772_s11] sm:$0x3] }
  0x31   :  { %v1999_v22 = vld [vmem:[%s3772_s11] sm:$0x3] }
  0x32   :  { %v527_v23 = vld [vmem:[%s3764_s3] sm:$0xff] }
  0x33   :  { %596 = vperm.xlu0 %2775, %v550_v43   ;;  %591 = vperm.xlu1 %2776, %v549_v44  }
  0x34   :  { %2397 = vmatprep.mubr.f32.mxu0 %v527_v23  ;;  %2453 = vmatprep.mubr.f32.mxu1 %v527_v23 }
  0x37   :  { %586 = vperm.xlu0 %2775, %v548_v45   ;;  %581 = vperm.xlu1 %2776, %v547_v46  }
  0x3b   :  { %576 = vperm.xlu0 %2775, %v546_v47   ;;  %571 = vperm.xlu1 %2776, %v545_v48  }
  0x3f   :  { %566 = vperm.xlu0 %2775, %v544_v49   ;;  %561 = vperm.xlu1 %2776, %v543_v50  }
  0x43   :  { %1070 = vperm.xlu0 %2775, %v992_v51   ;;  %1065 = vperm.xlu1 %2776, %v991_v52  }
  0x47   :  { %1060 = vperm.xlu0 %2775, %v990_v53   ;;  %1055 = vperm.xlu1 %2776, %v989_v54  }
  0x4b   :  { %1050 = vperm.xlu0 %2775, %v988_v55   ;;  %1045 = vperm.xlu1 %2776, %v987_v56  }
  0x4f   :  { %1040 = vperm.xlu0 %2775, %v986_v57   ;;  %1035 = vperm.xlu1 %2776, %v985_v58  }
  0x53   :  { %1030 = vperm.xlu0 %2775, %v984_v59   ;;  %1025 = vperm.xlu1 %2776, %v983_v60  }
  0x57   :  { %1020 = vperm.xlu0 %2775, %v982_v61   ;;  %1015 = vperm.xlu1 %2776, %v981_v62  }
  0x5b   :  { %1010 = vperm.xlu0 %2775, %v980_v63   ;;  %1005 = vperm.xlu1 %2776, %v979_v0  }
  0x5f   :  { %1000 = vperm.xlu0 %2775, %v978_v1   ;;  %995 = vperm.xlu1 %2776, %v977_v2  }
  0x63   :  { %1504 = vperm.xlu0 %2775, %v1426_v3   ;;  %1499 = vperm.xlu1 %2776, %v1425_v4  }
  0x67   :  { %1494 = vperm.xlu0 %2775, %v1424_v5   ;;  %1489 = vperm.xlu1 %2776, %v1423_v6  }
  0x6b   :  { %1484 = vperm.xlu0 %2775, %v1422_v7   ;;  %1479 = vperm.xlu1 %2776, %v1421_v8  }
  0x6f   :  { %1474 = vperm.xlu0 %2775, %v1420_v9   ;;  %1469 = vperm.xlu1 %2776, %v1419_v10  }
  0x73   :  { %1464 = vperm.xlu0 %2775, %v1418_v11   ;;  %1459 = vperm.xlu1 %2776, %v1417_v12  }
  0x77   :  { %1454 = vperm.xlu0 %2775, %v1416_v13   ;;  %1449 = vperm.xlu1 %2776, %v1415_v14  }
  0x7b   :  { %1444 = vperm.xlu0 %2775, %v1414_v15   ;;  %1439 = vperm.xlu1 %2776, %v1413_v16  }
  0x7e   :  { %v154_v36 = vpop.permute.xlu0 %153  ;;  %v144_v39 = vpop.permute.xlu1 %143 }
  0x7f   :  { %1434 = vperm.xlu0 %2775, %v1412_v17   ;;  %1429 = vperm.xlu1 %2776, %v1411_v18  }
  0x82   :  { %v149_v44 = vpop.permute.xlu0 %148  ;;  %v139_v47 = vpop.permute.xlu1 %138 }
  0x83   :  { %1833 = vperm.xlu0 %2775, %v1830_v19   ;;  %1922 = vperm.xlu1 %2776, %v1919_v20  }
  0x86   :  { %v134_v52 = vpop.permute.xlu0 %133  ;;  %v129_v55 = vpop.permute.xlu1 %128 }
  0x87   :  { %1913 = vperm.xlu0 %2775, %v1910_v21   ;;  %2002 = vperm.xlu1 %2776, %v1999_v22  }
  0x8a   :  { %v124_v60 = vpop.permute.xlu0 %123  ;;  %v119_v4 = vpop.permute.xlu1 %118 }
  0x8e   :  { %v114_v9 = vpop.permute.xlu0 %113  ;;  %v109_v12 = vpop.permute.xlu1 %108 }
  0x92   :  { %v104_v17 = vpop.permute.xlu0 %103  ;;  %v99_v21 = vpop.permute.xlu1 %98 }
  0xc6   :  { %v3421_v24 = vpop.f32.mrf.mxu0  ;;  %v3423_v25 = vpop.f32.mrf.mxu1 }
  0xc8   :  { %v3425_v26 = vpop.f32.mrf.mxu0  ;;  %v3427_v27 = vpop.f32.mrf.mxu1 }
  0xca   :  { %v3429_v28 = vpop.f32.mrf.mxu0  ;;  %v3431_v29 = vpop.f32.mrf.mxu1 }
  0xcc   :  { %v3433_v30 = vpop.f32.mrf.mxu0  ;;  %v3435_v31 = vpop.f32.mrf.mxu1 }
  0xce   :  { %v3437_v32 = vpop.f32.mrf.mxu0  ;;  %v3439_v33 = vpop.f32.mrf.mxu1 }
  0xd0   :  { %v3441_v34 = vpop.f32.mrf.mxu0  ;;  %v3443_v35 = vpop.f32.mrf.mxu1 }
  0xd2   :  { %v2326_v37 = vpop.f32.mrf.mxu0  ;;  %v2352_v38 = vpop.f32.mrf.mxu1 }
  0xd3   :  { %v307_v19 = vadd.f32 %v2326_v37, %v114_v9  ;;  %v468_v22 = vadd.f32 %v2352_v38, %v114_v9  ;;  %v458_v38 = vadd.f32 %v3439_v33, %v104_v17  ;;  %v529_v9 = vld [vmem:[%s3764_s3 + $0x10] sm:$0xff] }
  0xd4   :  { %v301_v40 = vpop.f32.mrf.mxu0  ;;  %v3445_v41 = vpop.f32.mrf.mxu1 }
  0xd6   :  { %v2329_v42 = vpop.f32.mrf.mxu0  ;;  %v2355_v43 = vpop.f32.mrf.mxu1 }
  0xd7   :  { %v317_v14 = vadd.f32 %v2329_v42, %v124_v60  ;;  %v478_v15 = vadd.f32 %v2355_v43, %v124_v60  ;;  %v463_v42 = vadd.f32 %v3445_v41, %v109_v12 }
  0xd8   :  { %v311_v45 = vpop.f32.mrf.mxu0  ;;  %v472_v46 = vpop.f32.mrf.mxu1 }
  0xd9   :  { %v312_v16 = vadd.f32 %v311_v45, %v119_v4  ;;  %v473_v18 = vadd.f32 %v472_v46, %v119_v4  ;;  %v94_v45 = vpop.permute.xlu0 %93  ;;  %v292_v46 = vadd.f32 %v3441_v34, %v99_v21 }
  0xda   :  { %v2332_v48 = vpop.f32.mrf.mxu0  ;;  %v2358_v49 = vpop.f32.mrf.mxu1 }
  0xdb   :  { %v327_v8 = vadd.f32 %v2332_v48, %v134_v52  ;;  %v488_v10 = vadd.f32 %v2358_v49, %v134_v52  ;;  %v287_v49 = vadd.f32 %v3429_v28, %v94_v45 }
  0xdc   :  { %v321_v50 = vpop.f32.mrf.mxu0  ;;  %v482_v51 = vpop.f32.mrf.mxu1 }
  0xdd   :  { %v322_v11 = vadd.f32 %v321_v50, %v129_v55  ;;  %v483_v13 = vadd.f32 %v482_v51, %v129_v55  ;;  %v448_v50 = vadd.f32 %v3431_v29, %v94_v45  ;;  %v84_v52 = vpop.permute.xlu0 %83 }
  0xde   :  { %v2335_v53 = vpop.f32.mrf.mxu0  ;;  %v2361_v54 = vpop.f32.mrf.mxu1 }
  0xdf   :  { %v337_v1 = vadd.f32 %v2335_v53, %v144_v39  ;;  %v498_v5 = vadd.f32 %v2361_v54, %v144_v39  ;;  %v277_v54 = vadd.f32 %v3421_v24, %v84_v52 }
  0xe0   :  { %v331_v56 = vpop.f32.mrf.mxu0  ;;  %v492_v57 = vpop.f32.mrf.mxu1 }
  0xe1   :  { %v332_v6 = vadd.f32 %v331_v56, %v139_v47  ;;  %v493_v7 = vadd.f32 %v492_v57, %v139_v47  ;;  %v89_v47 = vpop.permute.xlu1 %88 }
  0xe2   :  { %v2338_v58 = vpop.f32.mrf.mxu0  ;;  %v2364_v59 = vpop.f32.mrf.mxu1  ;;  %v282_v51 = vadd.f32 %v3433_v30, %v89_v47  ;;  %v443_v53 = vadd.f32 %v3435_v31, %v89_v47  ;;  %v438_v30 = vadd.f32 %v3423_v25, %v84_v52 }
  0xe3   :  { %v347_v61 = vadd.f32 %v2338_v58, %v154_v36  ;;  %v508_v62 = vadd.f32 %v2364_v59, %v154_v36  ;;  %v302_v36 = vadd.f32 %v301_v40, %v109_v12  ;;  %v532_v12 = vld [vmem:[%s3764_s3 + $0x28] sm:$0xff] }
  0xe4   :  { %v341_v63 = vpop.f32.mrf.mxu0  ;;  %v502_v0 = vpop.f32.mrf.mxu1 }
  0xe5   :  { %2777 = vtanh.f32 %v347_v61  ;;  %v342_v2 = vadd.f32 %v341_v63, %v149_v44  ;;  %v503_v3 = vadd.f32 %v502_v0, %v149_v44  ;;  %v297_v44 = vadd.f32 %v3437_v32, %v104_v17  ;;  %v79_v55 = vpop.permute.xlu1 %78  ;;  %v537_v17 = vld [vmem:[%s3764_s3 + $0x50] sm:$0xff] }
  0xe6   :  { %2779 = vtanh.f32 %v508_v62  ;;  %v453_v32 = vadd.f32 %v3443_v35, %v99_v21  ;;  %v272_v57 = vadd.f32 %v3425_v26, %v79_v55  ;;  %v433_v58 = vadd.f32 %v3427_v27, %v79_v55  ;;  %v541_v21 = vld [vmem:[%s3764_s3 + $0x70] sm:$0xff] }
  0xe7   :  { %2781 = vtanh.f32 %v342_v2 }
  0xe8   :  { %2783 = vtanh.f32 %v503_v3 }
  0xe9   :  { %2785 = vtanh.f32 %v337_v1 }
  0xea   :  { %2787 = vtanh.f32 %v498_v5 }
  0xeb   :  { %2789 = vtanh.f32 %v332_v6 }
  0xec   :  { %2791 = vtanh.f32 %v493_v7  ;;  %v528_v7 = vld [vmem:[%s3764_s3 + $0x8] sm:$0xff] }
  0xed   :  { %2793 = vtanh.f32 %v327_v8 }
  0xee   :  { %2795 = vtanh.f32 %v488_v10  ;;  %v530_v10 = vld [vmem:[%s3764_s3 + $0x18] sm:$0xff] }
  0xef   :  { %2797 = vtanh.f32 %v322_v11  ;;  %v531_v11 = vld [vmem:[%s3764_s3 + $0x20] sm:$0xff] }
  0xf0   :  { %2799 = vtanh.f32 %v483_v13  ;;  %v533_v13 = vld [vmem:[%s3764_s3 + $0x30] sm:$0xff] }
  0xf1   :  { %2801 = vtanh.f32 %v317_v14  ;;  %v534_v14 = vld [vmem:[%s3764_s3 + $0x38] sm:$0xff] }
  0xf2   :  { %v2778_v20 = vpop.eup %2777  ;;  %2803 = vtanh.f32 %v478_v15  ;;  %v535_v15 = vld [vmem:[%s3764_s3 + $0x40] sm:$0xff] }
  0xf3   :  { %v2780_v23 = vpop.eup %2779  ;;  %2805 = vtanh.f32 %v312_v16  ;;  %2365 = vmatprep.subr.mxu0 %v2778_v20  ;;  %v536_v16 = vld [vmem:[%s3764_s3 + $0x48] sm:$0xff] }
  0xf4   :  { %v2782_v39 = vpop.eup %2781  ;;  %2807 = vtanh.f32 %v473_v18  ;;  %2421 = vmatprep.subr.mxu1 %v2780_v23  ;;  %2366 = vmatpush3.msra.mxu0 %v2778_v20  ;;  %v538_v18 = vld [vmem:[%s3764_s3 + $0x58] sm:$0xff]  ;;  %v540_v20 = vld [vmem:[%s3764_s3 + $0x68] sm:$0xff] }
  0xf5   :  { %v2784_v43 = vpop.eup %2783  ;;  %2809 = vtanh.f32 %v307_v19  ;;  %2422 = vmatpush3.msra.mxu1 %v2780_v23  ;;  %2367 = vmatprep.subr.mxu0 %v2782_v39  ;;  %v539_v19 = vld [vmem:[%s3764_s3 + $0x60] sm:$0xff] }
  0xf6   :  { %v2786_v37 = vpop.eup %2785  ;;  %2811 = vtanh.f32 %v468_v22  ;;  %2423 = vmatprep.subr.mxu1 %v2784_v43  ;;  %2368 = vmatpush3.msra.mxu0 %v2782_v39  ;;  %v542_v22 = vld [vmem:[%s3764_s3 + $0x78] sm:$0xff]  ;;  %v961_v23 = vld [vmem:[%s3766_s5] sm:$0xff] }
  0xf7   :  { %v2788_v40 = vpop.eup %2787  ;;  %2813 = vtanh.f32 %v302_v36  ;;  %2424 = vmatpush3.msra.mxu1 %v2784_v43  ;;  %2369 = vmatprep.subr.mxu0 %v2786_v37 }
  0xf8   :  { %v2790_v41 = vpop.eup %2789  ;;  %2815 = vtanh.f32 %v463_v42  ;;  %2425 = vmatprep.subr.mxu1 %v2788_v40  ;;  %2370 = vmatpush3.msra.mxu0 %v2786_v37 }
  0xf9   :  { %v2792_v48 = vpop.eup %2791  ;;  %2817 = vtanh.f32 %v297_v44  ;;  %2426 = vmatpush3.msra.mxu1 %v2788_v40  ;;  %2371 = vmatprep.subr.mxu0 %v2790_v41 }
  0xfa   :  { %v2794_v33 = vpop.eup %2793  ;;  %2819 = vtanh.f32 %v458_v38  ;;  %2427 = vmatprep.subr.mxu1 %v2792_v48  ;;  %2372 = vmatpush3.msra.mxu0 %v2790_v41 }
  0xfb   :  { %v2796_v34 = vpop.eup %2795  ;;  %2821 = vtanh.f32 %v292_v46  ;;  %2428 = vmatpush3.msra.mxu1 %v2792_v48  ;;  %2373 = vmatprep.subr.mxu0 %v2794_v33 }
  0xfc   :  { %v2798_v35 = vpop.eup %2797  ;;  %2823 = vtanh.f32 %v453_v32  ;;  %2429 = vmatprep.subr.mxu1 %v2796_v34  ;;  %2374 = vmatpush3.msra.mxu0 %v2794_v33  ;;  %v637_v32 = vpop.permute.xlu0 %636 }
  0xfd   :  { %v2800_v28 = vpop.eup %2799  ;;  %2825 = vtanh.f32 %v287_v49  ;;  %2430 = vmatpush3.msra.mxu1 %v2796_v34  ;;  %2375 = vmatprep.subr.mxu0 %v2798_v35  ;;  %v632_v33 = vpop.permute.xlu1 %631 }
  0xfe   :  { %v2802_v29 = vpop.eup %2801  ;;  %2827 = vtanh.f32 %v448_v50  ;;  %2431 = vmatprep.subr.mxu1 %v2800_v28  ;;  %2376 = vmatpush3.msra.mxu0 %v2798_v35 }
  0xff   :  { %v2804_v56 = vpop.eup %2803  ;;  %2829 = vtanh.f32 %v282_v51  ;;  %2432 = vmatpush3.msra.mxu1 %v2800_v28  ;;  %2377 = vmatprep.subr.mxu0 %v2802_v29 }
 0x100   :  { %v2806_v31 = vpop.eup %2805  ;;  %2831 = vtanh.f32 %v443_v53  ;;  %2433 = vmatprep.subr.mxu1 %v2804_v56  ;;  %2378 = vmatpush3.msra.mxu0 %v2802_v29  ;;  %v627_v52 = vpop.permute.xlu0 %626 }
 0x101   :  { %v2808_v24 = vpop.eup %2807  ;;  %2833 = vtanh.f32 %v277_v54  ;;  %2434 = vmatpush3.msra.mxu1 %v2804_v56  ;;  %2379 = vmatprep.subr.mxu0 %v2806_v31  ;;  %v622_v54 = vpop.permute.xlu1 %621 }
 0x102   :  { %v2810_v25 = vpop.eup %2809  ;;  %2835 = vtanh.f32 %v438_v30  ;;  %2435 = vmatprep.subr.mxu1 %v2808_v24  ;;  %2380 = vmatpush3.msra.mxu0 %v2806_v31 }
 0x103   :  { %v2812_v59 = vpop.eup %2811  ;;  %2837 = vtanh.f32 %v272_v57  ;;  %2436 = vmatpush3.msra.mxu1 %v2808_v24  ;;  %2381 = vmatprep.subr.mxu0 %v2810_v25 }
 0x104   :  { %v2814_v26 = vpop.eup %2813  ;;  %2839 = vtanh.f32 %v433_v58  ;;  %2437 = vmatprep.subr.mxu1 %v2812_v59  ;;  %2382 = vmatpush3.msra.mxu0 %v2810_v25  ;;  %v617_v57 = vpop.permute.xlu0 %616 }
 0x105   :  { %v2816_v27 = vpop.eup %2815  ;;  %2438 = vmatpush3.msra.mxu1 %v2812_v59  ;;  %2383 = vmatprep.subr.mxu0 %v2814_v26  ;;  %v612_v24 = vpop.permute.xlu1 %611 }
 0x106   :  { %v2818_v60 = vpop.eup %2817  ;;  %2439 = vmatprep.subr.mxu1 %v2816_v27  ;;  %2384 = vmatpush3.msra.mxu0 %v2814_v26 }
 0x107   :  { %v2820_v61 = vpop.eup %2819  ;;  %2440 = vmatpush3.msra.mxu1 %v2816_v27  ;;  %2385 = vmatprep.subr.mxu0 %v2818_v60 }
 0x108   :  { %v2822_v62 = vpop.eup %2821  ;;  %2441 = vmatprep.subr.mxu1 %v2820_v61  ;;  %2386 = vmatpush3.msra.mxu0 %v2818_v60 }
 0x109   :  { %v2824_v63 = vpop.eup %2823  ;;  %2442 = vmatpush3.msra.mxu1 %v2820_v61  ;;  %2387 = vmatprep.subr.mxu0 %v2822_v62  ;;  %v607_v61 = vpop.permute.xlu0 %606 }
 0x10a   :  { %v2826_v0 = vpop.eup %2825  ;;  %2443 = vmatprep.subr.mxu1 %v2824_v63  ;;  %2388 = vmatpush3.msra.mxu0 %v2822_v62 }
 0x10b   :  { %v2828_v1 = vpop.eup %2827  ;;  %2444 = vmatpush3.msra.mxu1 %v2824_v63  ;;  %2389 = vmatprep.subr.mxu0 %v2826_v0 }
 0x10c   :  { %v2830_v2 = vpop.eup %2829  ;;  %2445 = vmatprep.subr.mxu1 %v2828_v1  ;;  %2390 = vmatpush3.msra.mxu0 %v2826_v0 }
 0x10d   :  { %v2832_v3 = vpop.eup %2831  ;;  %2446 = vmatpush3.msra.mxu1 %v2828_v1  ;;  %2391 = vmatprep.subr.mxu0 %v2830_v2 }
 0x10e   :  { %v2834_v4 = vpop.eup %2833  ;;  %2447 = vmatprep.subr.mxu1 %v2832_v3  ;;  %2392 = vmatpush3.msra.mxu0 %v2830_v2 }
 0x10f   :  { %v2836_v5 = vpop.eup %2835  ;;  %2448 = vmatpush3.msra.mxu1 %v2832_v3  ;;  %2393 = vmatprep.subr.mxu0 %v2834_v4  ;;  %v602_v3 = vpop.permute.xlu1 %601 }
 0x110   :  { %v2838_v6 = vpop.eup %2837  ;;  %2449 = vmatprep.subr.mxu1 %v2836_v5  ;;  %2394 = vmatpush3.msra.mxu0 %v2834_v4 }
 0x111   :  { %v2840_v8 = vpop.eup %2839  ;;  %2450 = vmatpush3.msra.mxu1 %v2836_v5  ;;  %2395 = vmatprep.subr.mxu0 %v2838_v6 }
 0x112   :  { %2451 = vmatprep.subr.mxu1 %v2840_v8  ;;  %2396 = vmatpush3.msra.mxu0 %v2838_v6 }
 0x113   :  { %2452 = vmatpush3.msra.mxu1 %v2840_v8  ;;  %2398 = vmatmul.mubr.f32.vlgmr.msra.gmra.mxu0 %v528_v7 }
 0x114   :  { %2454 = vmatmul.mubr.f32.vlgmr.msra.gmra.mxu1 %v528_v7  ;;  %2400 = vmatprep.mubr.f32.mxu0 %v529_v9 }
 0x115   :  { %2456 = vmatprep.mubr.f32.mxu1 %v529_v9  ;;  %v597_v9 = vpop.permute.xlu0 %596 }
 0x117   :  { %2401 = vmatmul.mubr.f32.gmra.mxu0 %v530_v10 }
 0x118   :  { %2457 = vmatmul.mubr.f32.gmra.mxu1 %v530_v10  ;;  %2403 = vmatprep.mubr.f32.mxu0 %v531_v11 }
 0x119   :  { %2459 = vmatprep.mubr.f32.mxu1 %v531_v11 }
 0x11b   :  { %2404 = vmatmul.mubr.f32.gmra.mxu0 %v532_v12 }
 0x11c   :  { %2460 = vmatmul.mubr.f32.gmra.mxu1 %v532_v12  ;;  %2406 = vmatprep.mubr.f32.mxu0 %v533_v13  ;;  %v592_v12 = vpop.permute.xlu1 %591 }
 0x11d   :  { %2462 = vmatprep.mubr.f32.mxu1 %v533_v13 }
 0x11f   :  { %2407 = vmatmul.mubr.f32.gmra.mxu0 %v534_v14 }
 0x120   :  { %2463 = vmatmul.mubr.f32.gmra.mxu1 %v534_v14  ;;  %2409 = vmatprep.mubr.f32.mxu0 %v535_v15 }
 0x121   :  { %2465 = vmatprep.mubr.f32.mxu1 %v535_v15 }
 0x123   :  { %2410 = vmatmul.mubr.f32.gmra.mxu0 %v536_v16 }
 0x124   :  { %2466 = vmatmul.mubr.f32.gmra.mxu1 %v536_v16  ;;  %2412 = vmatprep.mubr.f32.mxu0 %v537_v17 }
 0x125   :  { %2468 = vmatprep.mubr.f32.mxu1 %v537_v17  ;;  %v587_v17 = vpop.permute.xlu0 %586 }
 0x127   :  { %2413 = vmatmul.mubr.f32.gmra.mxu0 %v538_v18 }
 0x128   :  { %2469 = vmatmul.mubr.f32.gmra.mxu1 %v538_v18  ;;  %2415 = vmatprep.mubr.f32.mxu0 %v539_v19 }
 0x129   :  { %2471 = vmatprep.mubr.f32.mxu1 %v539_v19 }
 0x12b   :  { %2416 = vmatmul.mubr.f32.gmra.mxu0 %v540_v20 }
 0x12c   :  { %2472 = vmatmul.mubr.f32.gmra.mxu1 %v540_v20  ;;  %2418 = vmatprep.mubr.f32.mxu0 %v541_v21 }
 0x12d   :  { %2474 = vmatprep.mubr.f32.mxu1 %v541_v21  ;;  %v582_v21 = vpop.permute.xlu1 %581 }
 0x12f   :  { %2419 = vmatmul.mubr.f32.gmra.mxu0 %v542_v22 }
 0x130   :  { %2475 = vmatmul.mubr.f32.gmra.mxu1 %v542_v22  ;;  %2509 = vmatprep.mubr.f32.mxu0 %v961_v23 }
 0x131   :  { %2565 = vmatprep.mubr.f32.mxu1 %v961_v23 }
 0x1d3   :  { %v3508_v36 = vpop.f32.mrf.mxu0 }
 0x1d4   :  { %v3510_v39 = vpop.f32.mrf.mxu1 }
 0x1d5   :  { %v3512_v42 = vpop.f32.mrf.mxu0 }
 0x1d6   :  { %v3514_v43 = vpop.f32.mrf.mxu1 }
 0x1d7   :  { %v3516_v44 = vpop.f32.mrf.mxu0 }
 0x1d8   :  { %v3518_v37 = vpop.f32.mrf.mxu1 }
 0x1d9   :  { %v3520_v45 = vpop.f32.mrf.mxu0 }
 0x1da   :  { %v3522_v38 = vpop.f32.mrf.mxu1 }
 0x1db   :  { %v3524_v40 = vpop.f32.mrf.mxu0 }
 0x1dc   :  { %v3526_v46 = vpop.f32.mrf.mxu1 }
 0x1dd   :  { %v3528_v41 = vpop.f32.mrf.mxu0 }
 0x1de   :  { %v3530_v47 = vpop.f32.mrf.mxu1 }
 0x1df   :  { %v2408_v48 = vpop.f32.mrf.mxu0 }
 0x1e0   :  { %v2464_v49 = vpop.f32.mrf.mxu1  ;;  %v741_v19 = vadd.f32 %v2408_v48, %v597_v9 }
 0x1e1   :  { %v735_v50 = vpop.f32.mrf.mxu0  ;;  %v902_v22 = vadd.f32 %v2464_v49, %v597_v9  ;;  %v892_v49 = vadd.f32 %v3526_v46, %v587_v17  ;;  %v963_v9 = vld [vmem:[%s3766_s5 + $0x10] sm:$0xff] }
 0x1e2   :  { %v3532_v34 = vpop.f32.mrf.mxu1 }
 0x1e3   :  { %v2411_v51 = vpop.f32.mrf.mxu0 }
 0x1e4   :  { %v2467_v35 = vpop.f32.mrf.mxu1  ;;  %v751_v14 = vadd.f32 %v2411_v51, %v607_v61  ;;  %v897_v51 = vadd.f32 %v3532_v34, %v592_v12 }
 0x1e5   :  { %v745_v53 = vpop.f32.mrf.mxu0  ;;  %v912_v15 = vadd.f32 %v2467_v35, %v607_v61 }
 0x1e6   :  { %v906_v28 = vpop.f32.mrf.mxu1  ;;  %v746_v16 = vadd.f32 %v745_v53, %v602_v3  ;;  %v577_v53 = vpop.permute.xlu0 %576 }
 0x1e7   :  { %v2414_v29 = vpop.f32.mrf.mxu0  ;;  %v907_v18 = vadd.f32 %v906_v28, %v602_v3  ;;  %v726_v28 = vadd.f32 %v3528_v41, %v582_v21 }
 0x1e8   :  { %v2470_v55 = vpop.f32.mrf.mxu1  ;;  %v761_v8 = vadd.f32 %v2414_v29, %v617_v57 }
 0x1e9   :  { %v755_v30 = vpop.f32.mrf.mxu0  ;;  %v922_v10 = vadd.f32 %v2470_v55, %v617_v57  ;;  %v721_v55 = vadd.f32 %v3516_v44, %v577_v53 }
 0x1ea   :  { %v916_v56 = vpop.f32.mrf.mxu1  ;;  %v756_v11 = vadd.f32 %v755_v30, %v612_v24  ;;  %v882_v30 = vadd.f32 %v3518_v37, %v577_v53  ;;  %v567_v57 = vpop.permute.xlu0 %566 }
 0x1eb   :  { %v2417_v31 = vpop.f32.mrf.mxu0  ;;  %v917_v13 = vadd.f32 %v916_v56, %v612_v24 }
 0x1ec   :  { %v2473_v58 = vpop.f32.mrf.mxu1  ;;  %v771_v0 = vadd.f32 %v2417_v31, %v627_v52 }
 0x1ed   :  { %v765_v25 = vpop.f32.mrf.mxu0  ;;  %v932_v4 = vadd.f32 %v2473_v58, %v627_v52  ;;  %v731_v52 = vadd.f32 %v3524_v40, %v587_v17  ;;  %v887_v40 = vadd.f32 %v3530_v47, %v582_v21  ;;  %v711_v58 = vadd.f32 %v3508_v36, %v567_v57  ;;  %v971_v17 = vld [vmem:[%s3766_s5 + $0x50] sm:$0xff] }
 0x1ee   :  { %v926_v59 = vpop.f32.mrf.mxu1  ;;  %v766_v6 = vadd.f32 %v765_v25, %v622_v54  ;;  %v975_v21 = vld [vmem:[%s3766_s5 + $0x70] sm:$0xff] }
 0x1ef   :  { %v2420_v26 = vpop.f32.mrf.mxu0  ;;  %v927_v7 = vadd.f32 %v926_v59, %v622_v54  ;;  %v572_v54 = vpop.permute.xlu1 %571 }
 0x1f0   :  { %v781_v27 = vadd.f32 %v2420_v26, %v637_v32  ;;  %v2476_v60 = vpop.f32.mrf.mxu1  ;;  %v716_v56 = vadd.f32 %v3520_v45, %v572_v54  ;;  %v877_v31 = vadd.f32 %v3522_v38, %v572_v54  ;;  %v872_v45 = vadd.f32 %v3510_v39, %v567_v57 }
 0x1f1   :  { %v942_v62 = vadd.f32 %v2476_v60, %v637_v32  ;;  %v775_v63 = vpop.f32.mrf.mxu0  ;;  %v736_v32 = vadd.f32 %v735_v50, %v592_v12  ;;  %v966_v12 = vld [vmem:[%s3766_s5 + $0x28] sm:$0xff] }
 0x1f2   :  { %2841 = vtanh.f32 %v781_v27  ;;  %v776_v1 = vadd.f32 %v775_v63, %v632_v33  ;;  %v936_v2 = vpop.f32.mrf.mxu1 }
 0x1f3   :  { %2843 = vtanh.f32 %v942_v62  ;;  %v937_v5 = vadd.f32 %v936_v2, %v632_v33  ;;  %v562_v24 = vpop.permute.xlu1 %561 }
 0x1f4   :  { %2845 = vtanh.f32 %v776_v1  ;;  %v706_v59 = vadd.f32 %v3512_v42, %v562_v24  ;;  %v867_v26 = vadd.f32 %v3514_v43, %v562_v24 }
 0x1f5   :  { %2847 = vtanh.f32 %v937_v5 }
 0x1f6   :  { %2849 = vtanh.f32 %v771_v0 }
 0x1f7   :  { %2851 = vtanh.f32 %v932_v4 }
 0x1f8   :  { %2853 = vtanh.f32 %v766_v6 }
 0x1f9   :  { %2855 = vtanh.f32 %v927_v7  ;;  %v962_v7 = vld [vmem:[%s3766_s5 + $0x8] sm:$0xff] }
 0x1fa   :  { %2857 = vtanh.f32 %v761_v8 }
 0x1fb   :  { %2859 = vtanh.f32 %v922_v10  ;;  %v964_v10 = vld [vmem:[%s3766_s5 + $0x18] sm:$0xff] }
 0x1fc   :  { %2861 = vtanh.f32 %v756_v11  ;;  %v965_v11 = vld [vmem:[%s3766_s5 + $0x20] sm:$0xff] }
 0x1fd   :  { %2863 = vtanh.f32 %v917_v13  ;;  %v967_v13 = vld [vmem:[%s3766_s5 + $0x30] sm:$0xff] }
 0x1fe   :  { %2865 = vtanh.f32 %v751_v14  ;;  %v968_v14 = vld [vmem:[%s3766_s5 + $0x38] sm:$0xff] }
 0x1ff   :  { %v2842_v20 = vpop.eup %2841  ;;  %2867 = vtanh.f32 %v912_v15  ;;  %v969_v15 = vld [vmem:[%s3766_s5 + $0x40] sm:$0xff] }
 0x200   :  { %v2844_v23 = vpop.eup %2843  ;;  %2869 = vtanh.f32 %v746_v16  ;;  %2477 = vmatprep.subr.mxu0 %v2842_v20  ;;  %v970_v16 = vld [vmem:[%s3766_s5 + $0x48] sm:$0xff] }
 0x201   :  { %v2846_v33 = vpop.eup %2845  ;;  %2871 = vtanh.f32 %v907_v18  ;;  %2533 = vmatprep.subr.mxu1 %v2844_v23  ;;  %2478 = vmatpush3.msra.mxu0 %v2842_v20  ;;  %v972_v18 = vld [vmem:[%s3766_s5 + $0x58] sm:$0xff]  ;;  %v974_v20 = vld [vmem:[%s3766_s5 + $0x68] sm:$0xff] }
 0x202   :  { %v2848_v35 = vpop.eup %2847  ;;  %2873 = vtanh.f32 %v741_v19  ;;  %2534 = vmatpush3.msra.mxu1 %v2844_v23  ;;  %2479 = vmatprep.subr.mxu0 %v2846_v33  ;;  %v973_v19 = vld [vmem:[%s3766_s5 + $0x60] sm:$0xff] }
 0x203   :  { %v2850_v48 = vpop.eup %2849  ;;  %2875 = vtanh.f32 %v902_v22  ;;  %2535 = vmatprep.subr.mxu1 %v2848_v35  ;;  %2480 = vmatpush3.msra.mxu0 %v2846_v33  ;;  %v976_v22 = vld [vmem:[%s3766_s5 + $0x78] sm:$0xff]  ;;  %v1395_v23 = vld [vmem:[%s3768_s7] sm:$0xff] }
 0x204   :  { %v2852_v50 = vpop.eup %2851  ;;  %2877 = vtanh.f32 %v736_v32  ;;  %2536 = vmatpush3.msra.mxu1 %v2848_v35  ;;  %2481 = vmatprep.subr.mxu0 %v2850_v48 }
 0x205   :  { %v2854_v34 = vpop.eup %2853  ;;  %2879 = vtanh.f32 %v897_v51  ;;  %2537 = vmatprep.subr.mxu1 %v2852_v50  ;;  %2482 = vmatpush3.msra.mxu0 %v2850_v48 }
 0x206   :  { %v2856_v29 = vpop.eup %2855  ;;  %2881 = vtanh.f32 %v731_v52  ;;  %2538 = vmatpush3.msra.mxu1 %v2852_v50  ;;  %2483 = vmatprep.subr.mxu0 %v2854_v34 }
 0x207   :  { %v2858_v46 = vpop.eup %2857  ;;  %2883 = vtanh.f32 %v892_v49  ;;  %2539 = vmatprep.subr.mxu1 %v2856_v29  ;;  %2484 = vmatpush3.msra.mxu0 %v2854_v34 }
 0x208   :  { %v2860_v41 = vpop.eup %2859  ;;  %2885 = vtanh.f32 %v726_v28  ;;  %2540 = vmatpush3.msra.mxu1 %v2856_v29  ;;  %2485 = vmatprep.subr.mxu0 %v2858_v46 }
 0x209   :  { %v2862_v47 = vpop.eup %2861  ;;  %2887 = vtanh.f32 %v887_v40  ;;  %2541 = vmatprep.subr.mxu1 %v2860_v41  ;;  %2486 = vmatpush3.msra.mxu0 %v2858_v46  ;;  %v1071_v40 = vpop.permute.xlu0 %1070 }
 0x20a   :  { %v2864_v44 = vpop.eup %2863  ;;  %2889 = vtanh.f32 %v721_v55  ;;  %2542 = vmatpush3.msra.mxu1 %v2860_v41  ;;  %2487 = vmatprep.subr.mxu0 %v2862_v47  ;;  %v1066_v46 = vpop.permute.xlu1 %1065 }
 0x20b   :  { %v2866_v37 = vpop.eup %2865  ;;  %2891 = vtanh.f32 %v882_v30  ;;  %2543 = vmatprep.subr.mxu1 %v2864_v44  ;;  %2488 = vmatpush3.msra.mxu0 %v2862_v47 }
 0x20c   :  { %v2868_v25 = vpop.eup %2867  ;;  %2893 = vtanh.f32 %v716_v56  ;;  %2544 = vmatpush3.msra.mxu1 %v2864_v44  ;;  %2489 = vmatprep.subr.mxu0 %v2866_v37 }
 0x20d   :  { %v2870_v38 = vpop.eup %2869  ;;  %2895 = vtanh.f32 %v877_v31  ;;  %2545 = vmatprep.subr.mxu1 %v2868_v25  ;;  %2490 = vmatpush3.msra.mxu0 %v2866_v37  ;;  %v1061_v57 = vpop.permute.xlu0 %1060 }
 0x20e   :  { %v2872_v36 = vpop.eup %2871  ;;  %2897 = vtanh.f32 %v711_v58  ;;  %2546 = vmatpush3.msra.mxu1 %v2868_v25  ;;  %2491 = vmatprep.subr.mxu0 %v2870_v38  ;;  %v1056_v58 = vpop.permute.xlu1 %1055 }
 0x20f   :  { %v2874_v39 = vpop.eup %2873  ;;  %2899 = vtanh.f32 %v872_v45  ;;  %2547 = vmatprep.subr.mxu1 %v2872_v36  ;;  %2492 = vmatpush3.msra.mxu0 %v2870_v38 }
 0x210   :  { %v2876_v27 = vpop.eup %2875  ;;  %2901 = vtanh.f32 %v706_v59  ;;  %2548 = vmatpush3.msra.mxu1 %v2872_v36  ;;  %2493 = vmatprep.subr.mxu0 %v2874_v39 }
 0x211   :  { %v2878_v42 = vpop.eup %2877  ;;  %2903 = vtanh.f32 %v867_v26  ;;  %2549 = vmatprep.subr.mxu1 %v2876_v27  ;;  %2494 = vmatpush3.msra.mxu0 %v2874_v39  ;;  %v1051_v59 = vpop.permute.xlu0 %1050 }
 0x212   :  { %v2880_v43 = vpop.eup %2879  ;;  %2550 = vmatpush3.msra.mxu1 %v2876_v27  ;;  %2495 = vmatprep.subr.mxu0 %v2878_v42  ;;  %v1046_v36 = vpop.permute.xlu1 %1045 }
 0x213   :  { %v2882_v60 = vpop.eup %2881  ;;  %2551 = vmatprep.subr.mxu1 %v2880_v43  ;;  %2496 = vmatpush3.msra.mxu0 %v2878_v42 }
 0x214   :  { %v2884_v61 = vpop.eup %2883  ;;  %2552 = vmatpush3.msra.mxu1 %v2880_v43  ;;  %2497 = vmatprep.subr.mxu0 %v2882_v60 }
 0x215   :  { %v2886_v62 = vpop.eup %2885  ;;  %2553 = vmatprep.subr.mxu1 %v2884_v61  ;;  %2498 = vmatpush3.msra.mxu0 %v2882_v60 }
 0x216   :  { %v2888_v63 = vpop.eup %2887  ;;  %2554 = vmatpush3.msra.mxu1 %v2884_v61  ;;  %2499 = vmatprep.subr.mxu0 %v2886_v62  ;;  %v1041_v61 = vpop.permute.xlu0 %1040 }
 0x217   :  { %v2890_v0 = vpop.eup %2889  ;;  %2555 = vmatprep.subr.mxu1 %v2888_v63  ;;  %2500 = vmatpush3.msra.mxu0 %v2886_v62 }
 0x218   :  { %v2892_v1 = vpop.eup %2891  ;;  %2556 = vmatpush3.msra.mxu1 %v2888_v63  ;;  %2501 = vmatprep.subr.mxu0 %v2890_v0 }
 0x219   :  { %v2894_v2 = vpop.eup %2893  ;;  %2557 = vmatprep.subr.mxu1 %v2892_v1  ;;  %2502 = vmatpush3.msra.mxu0 %v2890_v0 }
 0x21a   :  { %v2896_v3 = vpop.eup %2895  ;;  %2558 = vmatpush3.msra.mxu1 %v2892_v1  ;;  %2503 = vmatprep.subr.mxu0 %v2894_v2 }
 0x21b   :  { %v2898_v4 = vpop.eup %2897  ;;  %2559 = vmatprep.subr.mxu1 %v2896_v3  ;;  %2504 = vmatpush3.msra.mxu0 %v2894_v2 }
 0x21c   :  { %v2900_v5 = vpop.eup %2899  ;;  %2560 = vmatpush3.msra.mxu1 %v2896_v3  ;;  %2505 = vmatprep.subr.mxu0 %v2898_v4  ;;  %v1036_v3 = vpop.permute.xlu1 %1035 }
 0x21d   :  { %v2902_v6 = vpop.eup %2901  ;;  %2561 = vmatprep.subr.mxu1 %v2900_v5  ;;  %2506 = vmatpush3.msra.mxu0 %v2898_v4 }
 0x21e   :  { %v2904_v8 = vpop.eup %2903  ;;  %2562 = vmatpush3.msra.mxu1 %v2900_v5  ;;  %2507 = vmatprep.subr.mxu0 %v2902_v6 }
 0x21f   :  { %2563 = vmatprep.subr.mxu1 %v2904_v8  ;;  %2508 = vmatpush3.msra.mxu0 %v2902_v6 }
 0x220   :  { %2564 = vmatpush3.msra.mxu1 %v2904_v8  ;;  %2510 = vmatmul.mubr.f32.vlgmr.msra.gmra.mxu0 %v962_v7 }
 0x221   :  { %2566 = vmatmul.mubr.f32.vlgmr.msra.gmra.mxu1 %v962_v7  ;;  %2512 = vmatprep.mubr.f32.mxu0 %v963_v9 }
 0x222   :  { %2568 = vmatprep.mubr.f32.mxu1 %v963_v9  ;;  %v1031_v9 = vpop.permute.xlu0 %1030 }
 0x224   :  { %2513 = vmatmul.mubr.f32.gmra.mxu0 %v964_v10 }
 0x225   :  { %2569 = vmatmul.mubr.f32.gmra.mxu1 %v964_v10  ;;  %2515 = vmatprep.mubr.f32.mxu0 %v965_v11 }
 0x226   :  { %2571 = vmatprep.mubr.f32.mxu1 %v965_v11 }
 0x228   :  { %2516 = vmatmul.mubr.f32.gmra.mxu0 %v966_v12 }
 0x229   :  { %2572 = vmatmul.mubr.f32.gmra.mxu1 %v966_v12  ;;  %2518 = vmatprep.mubr.f32.mxu0 %v967_v13  ;;  %v1026_v12 = vpop.permute.xlu1 %1025 }
 0x22a   :  { %2574 = vmatprep.mubr.f32.mxu1 %v967_v13 }
 0x22c   :  { %2519 = vmatmul.mubr.f32.gmra.mxu0 %v968_v14 }
 0x22d   :  { %2575 = vmatmul.mubr.f32.gmra.mxu1 %v968_v14  ;;  %2521 = vmatprep.mubr.f32.mxu0 %v969_v15 }
 0x22e   :  { %2577 = vmatprep.mubr.f32.mxu1 %v969_v15 }
 0x230   :  { %2522 = vmatmul.mubr.f32.gmra.mxu0 %v970_v16 }
 0x231   :  { %2578 = vmatmul.mubr.f32.gmra.mxu1 %v970_v16  ;;  %2524 = vmatprep.mubr.f32.mxu0 %v971_v17 }
 0x232   :  { %2580 = vmatprep.mubr.f32.mxu1 %v971_v17  ;;  %v1021_v17 = vpop.permute.xlu0 %1020 }
 0x234   :  { %2525 = vmatmul.mubr.f32.gmra.mxu0 %v972_v18 }
 0x235   :  { %2581 = vmatmul.mubr.f32.gmra.mxu1 %v972_v18  ;;  %2527 = vmatprep.mubr.f32.mxu0 %v973_v19 }
 0x236   :  { %2583 = vmatprep.mubr.f32.mxu1 %v973_v19 }
 0x238   :  { %2528 = vmatmul.mubr.f32.gmra.mxu0 %v974_v20 }
 0x239   :  { %2584 = vmatmul.mubr.f32.gmra.mxu1 %v974_v20  ;;  %2530 = vmatprep.mubr.f32.mxu0 %v975_v21 }
 0x23a   :  { %2586 = vmatprep.mubr.f32.mxu1 %v975_v21  ;;  %v1016_v21 = vpop.permute.xlu1 %1015 }
 0x23c   :  { %2531 = vmatmul.mubr.f32.gmra.mxu0 %v976_v22 }
 0x23d   :  { %2587 = vmatmul.mubr.f32.gmra.mxu1 %v976_v22  ;;  %2621 = vmatprep.mubr.f32.mxu0 %v1395_v23 }
 0x23e   :  { %2677 = vmatprep.mubr.f32.mxu1 %v1395_v23 }
 0x2e0   :  { %v3595_v32 = vpop.f32.mrf.mxu0 }
 0x2e1   :  { %v3597_v33 = vpop.f32.mrf.mxu1 }
 0x2e2   :  { %v3599_v51 = vpop.f32.mrf.mxu0 }
 0x2e3   :  { %v3601_v35 = vpop.f32.mrf.mxu1 }
 0x2e4   :  { %v3603_v52 = vpop.f32.mrf.mxu0 }
 0x2e5   :  { %v3605_v48 = vpop.f32.mrf.mxu1 }
 0x2e6   :  { %v3607_v53 = vpop.f32.mrf.mxu0 }
 0x2e7   :  { %v3609_v49 = vpop.f32.mrf.mxu1 }
 0x2e8   :  { %v3611_v50 = vpop.f32.mrf.mxu0 }
 0x2e9   :  { %v3613_v28 = vpop.f32.mrf.mxu1 }
 0x2ea   :  { %v3615_v34 = vpop.f32.mrf.mxu0 }
 0x2eb   :  { %v3617_v54 = vpop.f32.mrf.mxu1 }
 0x2ec   :  { %v2520_v29 = vpop.f32.mrf.mxu0 }
 0x2ed   :  { %v2576_v55 = vpop.f32.mrf.mxu1  ;;  %v1175_v19 = vadd.f32 %v2520_v29, %v1031_v9 }
 0x2ee   :  { %v1169_v30 = vpop.f32.mrf.mxu0  ;;  %v1336_v22 = vadd.f32 %v2576_v55, %v1031_v9  ;;  %v1326_v55 = vadd.f32 %v3613_v28, %v1021_v17  ;;  %v1397_v9 = vld [vmem:[%s3768_s7 + $0x10] sm:$0xff] }
 0x2ef   :  { %v3619_v41 = vpop.f32.mrf.mxu1 }
 0x2f0   :  { %v2523_v56 = vpop.f32.mrf.mxu0 }
 0x2f1   :  { %v2579_v47 = vpop.f32.mrf.mxu1  ;;  %v1185_v14 = vadd.f32 %v2523_v56, %v1041_v61  ;;  %v1331_v56 = vadd.f32 %v3619_v41, %v1026_v12 }
 0x2f2   :  { %v1179_v31 = vpop.f32.mrf.mxu0  ;;  %v1346_v15 = vadd.f32 %v2579_v47, %v1041_v61 }
 0x2f3   :  { %v1340_v44 = vpop.f32.mrf.mxu1  ;;  %v1180_v16 = vadd.f32 %v1179_v31, %v1036_v3  ;;  %v1011_v31 = vpop.permute.xlu0 %1010 }
 0x2f4   :  { %v2526_v37 = vpop.f32.mrf.mxu0  ;;  %v1341_v18 = vadd.f32 %v1340_v44, %v1036_v3  ;;  %v1160_v44 = vadd.f32 %v3615_v34, %v1016_v21 }
 0x2f5   :  { %v2582_v24 = vpop.f32.mrf.mxu1  ;;  %v1195_v8 = vadd.f32 %v2526_v37, %v1051_v59 }
 0x2f6   :  { %v1189_v45 = vpop.f32.mrf.mxu0  ;;  %v1356_v10 = vadd.f32 %v2582_v24, %v1051_v59  ;;  %v1155_v24 = vadd.f32 %v3603_v52, %v1011_v31 }
 0x2f7   :  { %v1350_v25 = vpop.f32.mrf.mxu1  ;;  %v1190_v11 = vadd.f32 %v1189_v45, %v1046_v36  ;;  %v1316_v45 = vadd.f32 %v3605_v48, %v1011_v31  ;;  %v1001_v59 = vpop.permute.xlu0 %1000 }
 0x2f8   :  { %v2529_v38 = vpop.f32.mrf.mxu0  ;;  %v1351_v13 = vadd.f32 %v1350_v25, %v1046_v36 }
 0x2f9   :  { %v2585_v26 = vpop.f32.mrf.mxu1  ;;  %v1205_v0 = vadd.f32 %v2529_v38, %v1061_v57 }
 0x2fa   :  { %v1199_v39 = vpop.f32.mrf.mxu0  ;;  %v1366_v4 = vadd.f32 %v2585_v26, %v1061_v57  ;;  %v1165_v57 = vadd.f32 %v3611_v50, %v1021_v17  ;;  %v1321_v50 = vadd.f32 %v3617_v54, %v1016_v21  ;;  %v1145_v26 = vadd.f32 %v3595_v32, %v1001_v59  ;;  %v1405_v17 = vld [vmem:[%s3768_s7 + $0x50] sm:$0xff] }
 0x2fb   :  { %v1360_v27 = vpop.f32.mrf.mxu1  ;;  %v1200_v6 = vadd.f32 %v1199_v39, %v1056_v58  ;;  %v1409_v21 = vld [vmem:[%s3768_s7 + $0x70] sm:$0xff] }
 0x2fc   :  { %v2532_v42 = vpop.f32.mrf.mxu0  ;;  %v1361_v7 = vadd.f32 %v1360_v27, %v1056_v58  ;;  %v1006_v58 = vpop.permute.xlu1 %1005 }
 0x2fd   :  { %v1215_v43 = vadd.f32 %v2532_v42, %v1071_v40  ;;  %v2588_v60 = vpop.f32.mrf.mxu1  ;;  %v1150_v25 = vadd.f32 %v3607_v53, %v1006_v58  ;;  %v1311_v38 = vadd.f32 %v3609_v49, %v1006_v58  ;;  %v1306_v53 = vadd.f32 %v3597_v33, %v1001_v59 }
 0x2fe   :  { %v1376_v62 = vadd.f32 %v2588_v60, %v1071_v40  ;;  %v1209_v63 = vpop.f32.mrf.mxu0  ;;  %v1170_v40 = vadd.f32 %v1169_v30, %v1026_v12  ;;  %v1400_v12 = vld [vmem:[%s3768_s7 + $0x28] sm:$0xff] }
 0x2ff   :  { %2905 = vtanh.f32 %v1215_v43  ;;  %v1210_v1 = vadd.f32 %v1209_v63, %v1066_v46  ;;  %v1370_v2 = vpop.f32.mrf.mxu1 }
 0x300   :  { %2907 = vtanh.f32 %v1376_v62  ;;  %v1371_v5 = vadd.f32 %v1370_v2, %v1066_v46  ;;  %v996_v36 = vpop.permute.xlu1 %995 }
 0x301   :  { %2909 = vtanh.f32 %v1210_v1  ;;  %v1140_v27 = vadd.f32 %v3599_v51, %v996_v36  ;;  %v1301_v42 = vadd.f32 %v3601_v35, %v996_v36 }
 0x302   :  { %2911 = vtanh.f32 %v1371_v5 }
 0x303   :  { %2913 = vtanh.f32 %v1205_v0 }
 0x304   :  { %2915 = vtanh.f32 %v1366_v4 }
 0x305   :  { %2917 = vtanh.f32 %v1200_v6 }
 0x306   :  { %2919 = vtanh.f32 %v1361_v7  ;;  %v1396_v7 = vld [vmem:[%s3768_s7 + $0x8] sm:$0xff] }
 0x307   :  { %2921 = vtanh.f32 %v1195_v8 }
 0x308   :  { %2923 = vtanh.f32 %v1356_v10  ;;  %v1398_v10 = vld [vmem:[%s3768_s7 + $0x18] sm:$0xff] }
 0x309   :  { %2925 = vtanh.f32 %v1190_v11  ;;  %v1399_v11 = vld [vmem:[%s3768_s7 + $0x20] sm:$0xff] }
 0x30a   :  { %2927 = vtanh.f32 %v1351_v13  ;;  %v1401_v13 = vld [vmem:[%s3768_s7 + $0x30] sm:$0xff] }
 0x30b   :  { %2929 = vtanh.f32 %v1185_v14  ;;  %v1402_v14 = vld [vmem:[%s3768_s7 + $0x38] sm:$0xff] }
 0x30c   :  { %v2906_v20 = vpop.eup %2905  ;;  %2931 = vtanh.f32 %v1346_v15  ;;  %v1403_v15 = vld [vmem:[%s3768_s7 + $0x40] sm:$0xff] }
 0x30d   :  { %v2908_v23 = vpop.eup %2907  ;;  %2933 = vtanh.f32 %v1180_v16  ;;  %2589 = vmatprep.subr.mxu0 %v2906_v20  ;;  %v1404_v16 = vld [vmem:[%s3768_s7 + $0x48] sm:$0xff] }
 0x30e   :  { %v2910_v46 = vpop.eup %2909  ;;  %2935 = vtanh.f32 %v1341_v18  ;;  %2645 = vmatprep.subr.mxu1 %v2908_v23  ;;  %2590 = vmatpush3.msra.mxu0 %v2906_v20  ;;  %v1406_v18 = vld [vmem:[%s3768_s7 + $0x58] sm:$0xff]  ;;  %v1408_v20 = vld [vmem:[%s3768_s7 + $0x68] sm:$0xff] }
 0x30f   :  { %v2912_v47 = vpop.eup %2911  ;;  %2937 = vtanh.f32 %v1175_v19  ;;  %2646 = vmatpush3.msra.mxu1 %v2908_v23  ;;  %2591 = vmatprep.subr.mxu0 %v2910_v46  ;;  %v1407_v19 = vld [vmem:[%s3768_s7 + $0x60] sm:$0xff]  ;;  %v3060_v23 = vmov 0.0  }
 0x310   :  { %v2914_v29 = vpop.eup %2913  ;;  %2939 = vtanh.f32 %v1336_v22  ;;  %2647 = vmatprep.subr.mxu1 %v2912_v47  ;;  %2592 = vmatpush3.msra.mxu0 %v2910_v46  ;;  %v1410_v22 = vld [vmem:[%s3768_s7 + $0x78] sm:$0xff] }
 0x311   :  { %v2916_v30 = vpop.eup %2915  ;;  %2941 = vtanh.f32 %v1170_v40  ;;  %2648 = vmatpush3.msra.mxu1 %v2912_v47  ;;  %2593 = vmatprep.subr.mxu0 %v2914_v29 }
 0x312   :  { %v2918_v41 = vpop.eup %2917  ;;  %2943 = vtanh.f32 %v1331_v56  ;;  %2649 = vmatprep.subr.mxu1 %v2916_v30  ;;  %2594 = vmatpush3.msra.mxu0 %v2914_v29 }
 0x313   :  { %v2920_v37 = vpop.eup %2919  ;;  %2945 = vtanh.f32 %v1165_v57  ;;  %2650 = vmatpush3.msra.mxu1 %v2916_v30  ;;  %2595 = vmatprep.subr.mxu0 %v2918_v41 }
 0x314   :  { %v2922_v28 = vpop.eup %2921  ;;  %2947 = vtanh.f32 %v1326_v55  ;;  %2651 = vmatprep.subr.mxu1 %v2920_v37  ;;  %2596 = vmatpush3.msra.mxu0 %v2918_v41 }
 0x315   :  { %v2924_v34 = vpop.eup %2923  ;;  %2949 = vtanh.f32 %v1160_v44  ;;  %2652 = vmatpush3.msra.mxu1 %v2920_v37  ;;  %2597 = vmatprep.subr.mxu0 %v2922_v28 }
 0x316   :  { %v2926_v54 = vpop.eup %2925  ;;  %2951 = vtanh.f32 %v1321_v50  ;;  %2653 = vmatprep.subr.mxu1 %v2924_v34  ;;  %2598 = vmatpush3.msra.mxu0 %v2922_v28  ;;  %v1505_v50 = vpop.permute.xlu0 %1504 }
 0x317   :  { %v2928_v52 = vpop.eup %2927  ;;  %2953 = vtanh.f32 %v1155_v24  ;;  %2654 = vmatpush3.msra.mxu1 %v2924_v34  ;;  %2599 = vmatprep.subr.mxu0 %v2926_v54  ;;  %v1500_v28 = vpop.permute.xlu1 %1499 }
 0x318   :  { %v2930_v48 = vpop.eup %2929  ;;  %2955 = vtanh.f32 %v1316_v45  ;;  %2655 = vmatprep.subr.mxu1 %v2928_v52  ;;  %2600 = vmatpush3.msra.mxu0 %v2926_v54 }
 0x319   :  { %v2932_v39 = vpop.eup %2931  ;;  %2957 = vtanh.f32 %v1150_v25  ;;  %2656 = vmatpush3.msra.mxu1 %v2928_v52  ;;  %2601 = vmatprep.subr.mxu0 %v2930_v48 }
 0x31a   :  { %v2934_v49 = vpop.eup %2933  ;;  %2959 = vtanh.f32 %v1311_v38  ;;  %2657 = vmatprep.subr.mxu1 %v2932_v39  ;;  %2602 = vmatpush3.msra.mxu0 %v2930_v48  ;;  %v1495_v59 = vpop.permute.xlu0 %1494 }
 0x31b   :  { %v2936_v32 = vpop.eup %2935  ;;  %2961 = vtanh.f32 %v1145_v26  ;;  %2658 = vmatpush3.msra.mxu1 %v2932_v39  ;;  %2603 = vmatprep.subr.mxu0 %v2934_v49  ;;  %v1490_v26 = vpop.permute.xlu1 %1489 }
 0x31c   :  { %v2938_v33 = vpop.eup %2937  ;;  %2963 = vtanh.f32 %v1306_v53  ;;  %2659 = vmatprep.subr.mxu1 %v2936_v32  ;;  %2604 = vmatpush3.msra.mxu0 %v2934_v49 }
 0x31d   :  { %v2940_v43 = vpop.eup %2939  ;;  %2965 = vtanh.f32 %v1140_v27  ;;  %2660 = vmatpush3.msra.mxu1 %v2936_v32  ;;  %2605 = vmatprep.subr.mxu0 %v2938_v33 }
 0x31e   :  { %v2942_v51 = vpop.eup %2941  ;;  %2967 = vtanh.f32 %v1301_v42  ;;  %2661 = vmatprep.subr.mxu1 %v2940_v43  ;;  %2606 = vmatpush3.msra.mxu0 %v2938_v33  ;;  %v1485_v27 = vpop.permute.xlu0 %1484 }
 0x31f   :  { %v2944_v35 = vpop.eup %2943  ;;  %2662 = vmatpush3.msra.mxu1 %v2940_v43  ;;  %2607 = vmatprep.subr.mxu0 %v2942_v51  ;;  %v1480_v32 = vpop.permute.xlu1 %1479 }
 0x320   :  { %v2946_v60 = vpop.eup %2945  ;;  %2663 = vmatprep.subr.mxu1 %v2944_v35  ;;  %2608 = vmatpush3.msra.mxu0 %v2942_v51 }
 0x321   :  { %v2948_v61 = vpop.eup %2947  ;;  %2664 = vmatpush3.msra.mxu1 %v2944_v35  ;;  %2609 = vmatprep.subr.mxu0 %v2946_v60 }
 0x322   :  { %v2950_v62 = vpop.eup %2949  ;;  %2665 = vmatprep.subr.mxu1 %v2948_v61  ;;  %2610 = vmatpush3.msra.mxu0 %v2946_v60 }
 0x323   :  { %v2952_v63 = vpop.eup %2951  ;;  %2666 = vmatpush3.msra.mxu1 %v2948_v61  ;;  %2611 = vmatprep.subr.mxu0 %v2950_v62  ;;  %v1475_v61 = vpop.permute.xlu0 %1474 }
 0x324   :  { %v2954_v0 = vpop.eup %2953  ;;  %2667 = vmatprep.subr.mxu1 %v2952_v63  ;;  %2612 = vmatpush3.msra.mxu0 %v2950_v62 }
 0x325   :  { %v2956_v1 = vpop.eup %2955  ;;  %2668 = vmatpush3.msra.mxu1 %v2952_v63  ;;  %2613 = vmatprep.subr.mxu0 %v2954_v0 }
 0x326   :  { %v2958_v2 = vpop.eup %2957  ;;  %2669 = vmatprep.subr.mxu1 %v2956_v1  ;;  %2614 = vmatpush3.msra.mxu0 %v2954_v0 }
 0x327   :  { %v2960_v3 = vpop.eup %2959  ;;  %2670 = vmatpush3.msra.mxu1 %v2956_v1  ;;  %2615 = vmatprep.subr.mxu0 %v2958_v2 }
 0x328   :  { %v2962_v4 = vpop.eup %2961  ;;  %2671 = vmatprep.subr.mxu1 %v2960_v3  ;;  %2616 = vmatpush3.msra.mxu0 %v2958_v2 }
 0x329   :  { %v2964_v5 = vpop.eup %2963  ;;  %2672 = vmatpush3.msra.mxu1 %v2960_v3  ;;  %2617 = vmatprep.subr.mxu0 %v2962_v4  ;;  %v1470_v3 = vpop.permute.xlu1 %1469 }
 0x32a   :  { %v2966_v6 = vpop.eup %2965  ;;  %2673 = vmatprep.subr.mxu1 %v2964_v5  ;;  %2618 = vmatpush3.msra.mxu0 %v2962_v4 }
 0x32b   :  { %v2968_v8 = vpop.eup %2967  ;;  %2674 = vmatpush3.msra.mxu1 %v2964_v5  ;;  %2619 = vmatprep.subr.mxu0 %v2966_v6 }
 0x32c   :  { %2675 = vmatprep.subr.mxu1 %v2968_v8  ;;  %2620 = vmatpush3.msra.mxu0 %v2966_v6 }
 0x32d   :  { %2676 = vmatpush3.msra.mxu1 %v2968_v8  ;;  %2622 = vmatmul.mubr.f32.vlgmr.msra.gmra.mxu0 %v1396_v7 }
 0x32e   :  { %2678 = vmatmul.mubr.f32.vlgmr.msra.gmra.mxu1 %v1396_v7  ;;  %2624 = vmatprep.mubr.f32.mxu0 %v1397_v9 }
 0x32f   :  { %2680 = vmatprep.mubr.f32.mxu1 %v1397_v9  ;;  %2701 = vmatprep.subr.mxu0 %v3060_v23  ;;  %v1465_v9 = vpop.permute.xlu0 %1464 }
 0x330   :  { %2736 = vmatprep.subr.mxu1 %v3060_v23 }
 0x331   :  { %2625 = vmatmul.mubr.f32.gmra.mxu0 %v1398_v10 }
 0x332   :  { %2681 = vmatmul.mubr.f32.gmra.mxu1 %v1398_v10  ;;  %2627 = vmatprep.mubr.f32.mxu0 %v1399_v11 }
 0x333   :  { %2683 = vmatprep.mubr.f32.mxu1 %v1399_v11 }
 0x335   :  { %2628 = vmatmul.mubr.f32.gmra.mxu0 %v1400_v12 }
 0x336   :  { %2684 = vmatmul.mubr.f32.gmra.mxu1 %v1400_v12  ;;  %2630 = vmatprep.mubr.f32.mxu0 %v1401_v13  ;;  %v1460_v12 = vpop.permute.xlu1 %1459 }
 0x337   :  { %2686 = vmatprep.mubr.f32.mxu1 %v1401_v13 }
 0x339   :  { %2631 = vmatmul.mubr.f32.gmra.mxu0 %v1402_v14 }
 0x33a   :  { %2687 = vmatmul.mubr.f32.gmra.mxu1 %v1402_v14  ;;  %2633 = vmatprep.mubr.f32.mxu0 %v1403_v15 }
 0x33b   :  { %2689 = vmatprep.mubr.f32.mxu1 %v1403_v15 }
 0x33d   :  { %2634 = vmatmul.mubr.f32.gmra.mxu0 %v1404_v16 }
 0x33e   :  { %2690 = vmatmul.mubr.f32.gmra.mxu1 %v1404_v16  ;;  %2636 = vmatprep.mubr.f32.mxu0 %v1405_v17 }
 0x33f   :  { %2692 = vmatprep.mubr.f32.mxu1 %v1405_v17  ;;  %v1455_v17 = vpop.permute.xlu0 %1454 }
 0x341   :  { %2637 = vmatmul.mubr.f32.gmra.mxu0 %v1406_v18 }
 0x342   :  { %2693 = vmatmul.mubr.f32.gmra.mxu1 %v1406_v18  ;;  %2639 = vmatprep.mubr.f32.mxu0 %v1407_v19 }
 0x343   :  { %2695 = vmatprep.mubr.f32.mxu1 %v1407_v19 }
 0x345   :  { %2640 = vmatmul.mubr.f32.gmra.mxu0 %v1408_v20 }
 0x346   :  { %2696 = vmatmul.mubr.f32.gmra.mxu1 %v1408_v20  ;;  %2642 = vmatprep.mubr.f32.mxu0 %v1409_v21 }
 0x347   :  { %2698 = vmatprep.mubr.f32.mxu1 %v1409_v21  ;;  %v1450_v21 = vpop.permute.xlu1 %1449 }
 0x349   :  { %2643 = vmatmul.mubr.f32.gmra.mxu0 %v1410_v22 }
 0x34a   :  { %2699 = vmatmul.mubr.f32.gmra.mxu1 %v1410_v22  ;;  %2733 = vmatprep.mubr.msk.f32.mxu0 %vm3061_vm1, %v3060_v23 }
 0x34b   :  { %2768 = vmatprep.mubr.msk.f32.mxu1 %vm3061_vm1, %v3060_v23 }
 0x3ed   :  { %v3683_v40 = vpop.f32.mrf.mxu0 }
 0x3ee   :  { %v3685_v46 = vpop.f32.mrf.mxu1 }
 0x3ef   :  { %v3687_v56 = vpop.f32.mrf.mxu0 }
 0x3f0   :  { %v3689_v47 = vpop.f32.mrf.mxu1 }
 0x3f1   :  { %v3691_v57 = vpop.f32.mrf.mxu0 }
 0x3f2   :  { %v3693_v29 = vpop.f32.mrf.mxu1 }
 0x3f3   :  { %v3695_v31 = vpop.f32.mrf.mxu0 }
 0x3f4   :  { %v3697_v55 = vpop.f32.mrf.mxu1 }
 0x3f5   :  { %v3699_v30 = vpop.f32.mrf.mxu0 }
 0x3f6   :  { %v3701_v44 = vpop.f32.mrf.mxu1 }
 0x3f7   :  { %v3703_v41 = vpop.f32.mrf.mxu0 }
 0x3f8   :  { %v3705_v58 = vpop.f32.mrf.mxu1 }
 0x3f9   :  { %v2632_v37 = vpop.f32.mrf.mxu0 }
 0x3fa   :  { %v2688_v24 = vpop.f32.mrf.mxu1  ;;  %v1609_v19 = vadd.f32 %v2632_v37, %v1465_v9 }
 0x3fb   :  { %v1603_v45 = vpop.f32.mrf.mxu0  ;;  %v1770_v22 = vadd.f32 %v2688_v24, %v1465_v9  ;;  %v1445_v24 = vpop.permute.xlu0 %1444  ;;  %v1918_v9 = vld [vmem:[%s3770_s9] sm:$0x3] }
 0x3fc   :  { %v3707_v34 = vpop.f32.mrf.mxu1 }
 0x3fd   :  { %v2635_v25 = vpop.f32.mrf.mxu0 }
 0x3fe   :  { %v2691_v54 = vpop.f32.mrf.mxu1  ;;  %v1619_v14 = vadd.f32 %v2635_v25, %v1475_v61  ;;  %v1765_v25 = vadd.f32 %v3707_v34, %v1460_v12 }
 0x3ff   :  { %v1613_v38 = vpop.f32.mrf.mxu0  ;;  %v1780_v15 = vadd.f32 %v2691_v54, %v1475_v61 }
 0x400   :  { %v1774_v52 = vpop.f32.mrf.mxu1  ;;  %v1614_v16 = vadd.f32 %v1613_v38, %v1470_v3  ;;  %v1599_v38 = vadd.f32 %v3699_v30, %v1455_v17 }
 0x401   :  { %v2638_v48 = vpop.f32.mrf.mxu0  ;;  %v1775_v18 = vadd.f32 %v1774_v52, %v1470_v3  ;;  %v1594_v52 = vadd.f32 %v3703_v41, %v1450_v21 }
 0x402   :  { %v2694_v36 = vpop.f32.mrf.mxu1  ;;  %v1629_v8 = vadd.f32 %v2638_v48, %v1485_v27  ;;  %v1755_v48 = vadd.f32 %v3705_v58, %v1450_v21 }
 0x403   :  { %v1623_v53 = vpop.f32.mrf.mxu0  ;;  %v1790_v10 = vadd.f32 %v2694_v36, %v1485_v27  ;;  %v1589_v36 = vadd.f32 %v3691_v57, %v1445_v24  ;;  %v1435_v57 = vpop.permute.xlu0 %1434 }
 0x404   :  { %v1784_v39 = vpop.f32.mrf.mxu1  ;;  %v1624_v11 = vadd.f32 %v1623_v53, %v1480_v32  ;;  %v1750_v53 = vadd.f32 %v3693_v29, %v1445_v24 }
 0x405   :  { %v2641_v49 = vpop.f32.mrf.mxu0  ;;  %v1785_v13 = vadd.f32 %v1784_v39, %v1480_v32 }
 0x406   :  { %v2697_v42 = vpop.f32.mrf.mxu1  ;;  %v1639_v0 = vadd.f32 %v2641_v49, %v1495_v59 }
 0x407   :  { %v1633_v33 = vpop.f32.mrf.mxu0  ;;  %v1800_v4 = vadd.f32 %v2697_v42, %v1495_v59  ;;  %v1579_v42 = vadd.f32 %v3683_v40, %v1435_v57 }
 0x408   :  { %v1794_v43 = vpop.f32.mrf.mxu1  ;;  %v1634_v6 = vadd.f32 %v1633_v33, %v1490_v26  ;;  %v1740_v33 = vadd.f32 %v3685_v46, %v1435_v57 }
 0x409   :  { %v2644_v51 = vpop.f32.mrf.mxu0  ;;  %v1795_v7 = vadd.f32 %v1794_v43, %v1490_v26  ;;  %v1440_v26 = vpop.permute.xlu1 %1439 }
 0x40a   :  { %v1649_v35 = vadd.f32 %v2644_v51, %v1505_v50  ;;  %v2700_v60 = vpop.f32.mrf.mxu1  ;;  %v1584_v58 = vadd.f32 %v3695_v31, %v1440_v26  ;;  %v1745_v49 = vadd.f32 %v3697_v55, %v1440_v26 }
 0x40b   :  { %v1810_v62 = vadd.f32 %v2700_v60, %v1505_v50  ;;  %v1643_v63 = vpop.f32.mrf.mxu0 }
 0x40c   :  { %2969 = vtanh.f32 %v1649_v35  ;;  %v1644_v1 = vadd.f32 %v1643_v63, %v1500_v28  ;;  %v1804_v2 = vpop.f32.mrf.mxu1 }
 0x40d   :  { %2971 = vtanh.f32 %v1810_v62  ;;  %v1805_v5 = vadd.f32 %v1804_v2, %v1500_v28  ;;  %v1604_v28 = vadd.f32 %v1603_v45, %v1460_v12  ;;  %v1760_v45 = vadd.f32 %v3701_v44, %v1455_v17  ;;  %v1430_v32 = vpop.permute.xlu1 %1429 }
 0x40e   :  { %2973 = vtanh.f32 %v1644_v1  ;;  %v1574_v43 = vadd.f32 %v3687_v56, %v1430_v32  ;;  %v1735_v51 = vadd.f32 %v3689_v47, %v1430_v32 }
 0x40f   :  { %2975 = vtanh.f32 %v1805_v5 }
 0x410   :  { %2977 = vtanh.f32 %v1639_v0 }
 0x411   :  { %2979 = vtanh.f32 %v1800_v4 }
 0x412   :  { %2981 = vtanh.f32 %v1634_v6 }
 0x413   :  { %2983 = vtanh.f32 %v1795_v7  ;;  %v1829_v7 = vld [vmem:[%s3770_s9] sm:$0x3]  ;;  %s3062_s9 = smov [#allocation2]  }
 0x414   :  { %2985 = vtanh.f32 %v1629_v8  ;;  %s2013_s17 = sshll.u32 %s3062_s9, 4  ;;  %s2014_s17 = int_to_ptr.vmem [resolvable:$true] %s2013_s17 }
 0x415   :  { %2987 = vtanh.f32 %v1790_v10  ;;  %s3037_s6 = scalar_lea.vmem %s2014_s17, 64  ;;  %p3042_p1 = scmp.lt.s32.totalorder %s2014_s17, %s2014_s17 }
 0x416   :  { %2989 = vtanh.f32 %v1624_v11  ;;  %v1834_v11 = vpop.permute.xlu0 %1833  ;;  %p3038_p0 = scmp.ne.s32.totalorder %s2014_s17, %s3037_s6  ;;  %p3043_p2 = scmp.lt.s32.totalorder %s3037_s6, %s3037_s6 }
 0x417   :  { %2991 = vtanh.f32 %v1785_v13  ;;  %v1923_v13 = vpop.permute.xlu1 %1922 }
 0x418   :  { %2993 = vtanh.f32 %v1619_v14  ;;  %p3044_p3 = por %p3043_p2, %p3042_p1 }
 0x419   :  { %v2970_v20 = vpop.eup %2969  ;;  %2995 = vtanh.f32 %v1780_v15 }
 0x41a   :  { %v2972_v50 = vpop.eup %2971  ;;  %2997 = vtanh.f32 %v1614_v16  ;;  %2702 = vmatpush3.msra.mxu0 %v2970_v20  ;;  %p3045_p4 = pnand %p3044_p3, %p3038_p0 }
 0x41b   :  { %v2974_v59 = vpop.eup %2973  ;;  %2999 = vtanh.f32 %v1775_v18  ;;  %2737 = vmatpush3.msra.mxu1 %v2972_v50  ;;  %2703 = vmatprep.subr.mxu0 %v3060_v23 }
 0x41c   :  { %v2976_v54 = vpop.eup %2975  ;;  %3001 = vtanh.f32 %v1609_v19  ;;  %2738 = vmatprep.subr.mxu1 %v3060_v23  ;;  %2704 = vmatpush3.msra.mxu0 %v2974_v59  ;;  %v1914_v59 = vpop.permute.xlu0 %1913 }
 0x41d   :  { %v2978_v37 = vpop.eup %2977  ;;  %3003 = vtanh.f32 %v1770_v22  ;;  %2739 = vmatpush3.msra.mxu1 %v2976_v54  ;;  %2705 = vmatprep.subr.mxu0 %v3060_v23  ;;  %v2003_v54 = vpop.permute.xlu1 %2002 }
 0x41e   :  { %v2980_v34 = vpop.eup %2979  ;;  %3005 = vtanh.f32 %v1604_v28  ;;  %2740 = vmatprep.subr.mxu1 %v3060_v23  ;;  %2706 = vmatpush3.msra.mxu0 %v2978_v37 }
 0x41f   :  { %v2982_v30 = vpop.eup %2981  ;;  %3007 = vtanh.f32 %v1765_v25  ;;  %2741 = vmatpush3.msra.mxu1 %v2980_v34  ;;  %2707 = vmatprep.subr.mxu0 %v3060_v23 }
 0x420   :  { %v2984_v44 = vpop.eup %2983  ;;  %3009 = vtanh.f32 %v1599_v38  ;;  %2742 = vmatprep.subr.mxu1 %v3060_v23  ;;  %2708 = vmatpush3.msra.mxu0 %v2982_v30 }
 0x421   :  { %v2986_v41 = vpop.eup %2985  ;;  %3011 = vtanh.f32 %v1760_v45  ;;  %2743 = vmatpush3.msra.mxu1 %v2984_v44  ;;  %2709 = vmatprep.subr.mxu0 %v3060_v23 }
 0x422   :  { %v2988_v39 = vpop.eup %2987  ;;  %3013 = vtanh.f32 %v1594_v52  ;;  %2744 = vmatprep.subr.mxu1 %v3060_v23  ;;  %2710 = vmatpush3.msra.mxu0 %v2986_v41 }
 0x423   :  { %v2990_v27 = vpop.eup %2989  ;;  %3015 = vtanh.f32 %v1755_v48  ;;  %2745 = vmatpush3.msra.mxu1 %v2988_v39  ;;  %2711 = vmatprep.subr.mxu0 %v3060_v23 }
 0x424   :  { %v2992_v29 = vpop.eup %2991  ;;  %3017 = vtanh.f32 %v1589_v36  ;;  %2746 = vmatprep.subr.mxu1 %v3060_v23  ;;  %2712 = vmatpush3.msra.mxu0 %v2990_v27 }
 0x425   :  { %v2994_v31 = vpop.eup %2993  ;;  %3019 = vtanh.f32 %v1750_v53  ;;  %2747 = vmatpush3.msra.mxu1 %v2992_v29  ;;  %2713 = vmatprep.subr.mxu0 %v3060_v23 }
 0x426   :  { %v2996_v55 = vpop.eup %2995  ;;  %3021 = vtanh.f32 %v1584_v58  ;;  %2748 = vmatprep.subr.mxu1 %v3060_v23  ;;  %2714 = vmatpush3.msra.mxu0 %v2994_v31 }
 0x427   :  { %v2998_v40 = vpop.eup %2997  ;;  %3023 = vtanh.f32 %v1745_v49  ;;  %2749 = vmatpush3.msra.mxu1 %v2996_v55  ;;  %2715 = vmatprep.subr.mxu0 %v3060_v23 }
 0x428   :  { %v3000_v35 = vpop.eup %2999  ;;  %3025 = vtanh.f32 %v1579_v42  ;;  %2750 = vmatprep.subr.mxu1 %v3060_v23  ;;  %2716 = vmatpush3.msra.mxu0 %v2998_v40 }
 0x429   :  { %v3002_v46 = vpop.eup %3001  ;;  %3027 = vtanh.f32 %v1740_v33  ;;  %2751 = vmatpush3.msra.mxu1 %v3000_v35  ;;  %2717 = vmatprep.subr.mxu0 %v3060_v23 }
 0x42a   :  { %v3004_v56 = vpop.eup %3003  ;;  %3029 = vtanh.f32 %v1574_v43  ;;  %2752 = vmatprep.subr.mxu1 %v3060_v23  ;;  %2718 = vmatpush3.msra.mxu0 %v3002_v46 }
 0x42b   :  { %v3006_v47 = vpop.eup %3005  ;;  %3031 = vtanh.f32 %v1735_v51  ;;  %2753 = vmatpush3.msra.mxu1 %v3004_v56  ;;  %2719 = vmatprep.subr.mxu0 %v3060_v23 }
 0x42c   :  { %v3008_v60 = vpop.eup %3007  ;;  %2754 = vmatprep.subr.mxu1 %v3060_v23  ;;  %2720 = vmatpush3.msra.mxu0 %v3006_v47 }
 0x42d   :  { %v3010_v61 = vpop.eup %3009  ;;  %2755 = vmatpush3.msra.mxu1 %v3008_v60  ;;  %2721 = vmatprep.subr.mxu0 %v3060_v23 }
 0x42e   :  { %v3012_v62 = vpop.eup %3011  ;;  %2756 = vmatprep.subr.mxu1 %v3060_v23  ;;  %2722 = vmatpush3.msra.mxu0 %v3010_v61 }
 0x42f   :  { %v3014_v63 = vpop.eup %3013  ;;  %2757 = vmatpush3.msra.mxu1 %v3012_v62  ;;  %2723 = vmatprep.subr.mxu0 %v3060_v23 }
 0x430   :  { %v3016_v0 = vpop.eup %3015  ;;  %2758 = vmatprep.subr.mxu1 %v3060_v23  ;;  %2724 = vmatpush3.msra.mxu0 %v3014_v63 }
 0x431   :  { %v3018_v1 = vpop.eup %3017  ;;  %2759 = vmatpush3.msra.mxu1 %v3016_v0  ;;  %2725 = vmatprep.subr.mxu0 %v3060_v23 }
 0x432   :  { %v3020_v2 = vpop.eup %3019  ;;  %2760 = vmatprep.subr.mxu1 %v3060_v23  ;;  %2726 = vmatpush3.msra.mxu0 %v3018_v1 }
 0x433   :  { %v3022_v3 = vpop.eup %3021  ;;  %2761 = vmatpush3.msra.mxu1 %v3020_v2  ;;  %2727 = vmatprep.subr.mxu0 %v3060_v23 }
 0x434   :  { %v3024_v4 = vpop.eup %3023  ;;  %2762 = vmatprep.subr.mxu1 %v3060_v23  ;;  %2728 = vmatpush3.msra.mxu0 %v3022_v3 }
 0x435   :  { %v3026_v5 = vpop.eup %3025  ;;  %2763 = vmatpush3.msra.mxu1 %v3024_v4  ;;  %2729 = vmatprep.subr.mxu0 %v3060_v23 }
 0x436   :  { %v3028_v6 = vpop.eup %3027  ;;  %2764 = vmatprep.subr.mxu1 %v3060_v23  ;;  %2730 = vmatpush3.msra.mxu0 %v3026_v5 }
 0x437   :  { %v3030_v8 = vpop.eup %3029  ;;  %2765 = vmatpush3.msra.mxu1 %v3028_v6  ;;  %2731 = vmatprep.subr.mxu0 %v3060_v23 }
 0x438   :  { %v3032_v10 = vpop.eup %3031  ;;  %2766 = vmatprep.subr.mxu1 %v3060_v23  ;;  %2732 = vmatpush3.msra.mxu0 %v3030_v8 }
 0x439   :  { %2767 = vmatpush3.msra.mxu1 %v3032_v10  ;;  %2734 = vmatmul.mubr.f32.vlgmr.msra.gmra.mxu0 %v1829_v7 }
 0x43a   :  { %2769 = vmatmul.mubr.f32.vlgmr.msra.gmra.mxu1 %v1918_v9 }
 0x4f9   :  { %v1902_v12 = vpop.f32.mrf.mxu0 }
 0x4fa   :  { %v1903_v14 = vadd.f32 %v1902_v12, %v1834_v11  ;;  %v1991_v15 = vpop.f32.mrf.mxu1 }
 0x4fb   :  { %v1992_v16 = vadd.f32 %v1991_v15, %v1923_v13  ;;  %v2735_v17 = vpop.f32.mrf.mxu0 }
 0x4fc   :  { %v1906_v18 = vmul.f32 0.25, %v1903_v14  ;;  %v2770_v19 = vpop.f32.mrf.mxu1 }
 0x4fd   :  { %v1995_v20 = vmul.f32 0.25, %v1992_v16 }
 0x4fe   :  { %3033 = vtanh.f32 %v1906_v18 }
 0x4ff   :  { %3035 = vtanh.f32 %v1995_v20 }
 0x50b   :  { %v3034_v21 = vpop.eup %3033 }
 0x50c   :  { %v3036_v22 = vpop.eup %3035  ;;  %v1908_v50 = vadd.f32 1.0, %v3034_v21 }
 0x50d   :  { %v1997_v23 = vadd.f32 1.0, %v3036_v22 }
 0x50e   :  { %v1909_v28 = vmul.f32 0.5, %v1908_v50 }
 0x50f   :  { %v1998_v25 = vmul.f32 0.5, %v1997_v23 }
 0x510   :  { %v1916_v38 = vmul.f32 %v1914_v59, %v1909_v28 }
 0x511   :  { %v2005_v37 = vmul.f32 %v2003_v54, %v1998_v25 }
 0x512   :  { %1917 = vst [vmem:[#allocation2] sm:$0x3] %v1916_v38 }
 0x513   :  { %2006 = vst [vmem:[#allocation2 + $0x2] sm:$0x3] %v2005_v37 }
 0x514   :  { %3048 = shalt.err (!%p3045_p4)
}
 0x515   :  { %2016 = dma.vmem_to_hbm [thread:$0]  %s2014_s17, 64, %s3773_s12, [#allocation3]  }
 0x516   :  { %3057 = dma.done.wait [#allocation3], 64  }
 0x517   :  { %3058 = vsyncadd [#allocation3], 4294967232 }
 0x518   :  { %2020 = vsyncpa [#allocation3], 1 }

</bundles_post_ra>
